<compile_context>
chip_gen: v6e
topology: v6e:2x2x1
jax: 0.10.0
libtpu: 0.0.40
codegen_flags: <defaults>
</compile_context>

<pallas_src>
import math
import jax
import jax.numpy as jnp
from jax.experimental import pallas as pl
from jax.experimental.pallas import tpu as pltpu  # noqa: F401  (imported per convention)

B, S, D, H, DFF, NLAYERS = 2, 8, 32, 4, 64, 2
DK = D // H
EPS = 1e-6


def _layernorm(x, a, b):
    # Matches the PyTorch LayerNorm: torch.std is unbiased (ddof = 1).
    mean = jnp.mean(x, axis=-1, keepdims=True)
    var = jnp.sum((x - mean) ** 2, axis=-1, keepdims=True) / (x.shape[-1] - 1)
    std = jnp.sqrt(var)
    return a * (x - mean) / (std + EPS) + b


def encoder_kernel(x_ref, mask_ref, w_attn_ref, w1_ref, w2_ref,
                   vec_ref, b1_ref, fin_ref, out_ref):
    # Tokens on sublanes, model dim on lanes; x stays resident for the whole pass.
    x = x_ref[...].reshape(B * S, D)                       # (B*S, D)

    # Additive attention bias, computed ONCE and reused by every layer / head.
    mask_bias = (mask_ref[...] - 1.0) * 1e9                # (B, S, S): 0 attend / -1e9 masked

    for l in range(NLAYERS):                               # static unroll (NLAYERS = 2)
        vec = vec_ref[l]                                   # (9, D) packed LN params + biases
        ln1_a, ln1_b = vec[0:1], vec[1:2]
        bq, bk, bv, bo = vec[2:3], vec[3:4], vec[4:5], vec[5:6]
        ln2_a, ln2_b, b2 = vec[6:7], vec[7:8], vec[8:9]
        w_attn = w_attn_ref[l]                             # (D, 4D) = [wq*scale | wk | wv | wo]

        # ---- self-attention sublayer (pre-norm + residual) ----
        xn = _layernorm(x, ln1_a, ln1_b)
        qkv = jnp.dot(xn, w_attn[:, :3 * D], preferred_element_type=jnp.float32)
        q = qkv[:, 0:D] + bq                               # 1/sqrt(DK) already folded in
        k = qkv[:, D:2 * D] + bk
        v = qkv[:, 2 * D:3 * D] + bv

        heads = []
        for h in range(H):                                 # static unroll; einsums batch over B
            sl = slice(h * DK, (h + 1) * DK)
            qh = q[:, sl].reshape(B, S, DK)
            kh = k[:, sl].reshape(B, S, DK)
            vh = v[:, sl].reshape(B, S, DK)
            sc = jnp.einsum("bqd,bkd->bqk", qh, kh,
                            preferred_element_type=jnp.float32)      # (B, S, S)
            sc = sc + mask_bias
            m = jnp.max(sc, axis=-1, keepdims=True)
            e = jnp.exp(sc - m)
            p = e * pl.reciprocal(jnp.sum(e, axis=-1, keepdims=True), approx=True)
            hd = jnp.einsum("bqk,bkd->bqd", p, vh,
                            preferred_element_type=jnp.float32)      # (B, S, DK)
            heads.append(hd.reshape(B * S, DK))
        attn = jnp.concatenate(heads, axis=-1)             # (B*S, D) concat(heads)
        x = x + jnp.dot(attn, w_attn[:, 3 * D:],
                        preferred_element_type=jnp.float32) + bo

        # ---- feed-forward sublayer (pre-norm + residual) ----
        xn2 = _layernorm(x, ln2_a, ln2_b)
        hid = jnp.maximum(
            jnp.dot(xn2, w1_ref[l], preferred_element_type=jnp.float32) + b1_ref[l],
            0.0)
        x = x + jnp.dot(hid, w2_ref[l], preferred_element_type=jnp.float32) + b2

    # ---- final Encoder LayerNorm ----
    fin = fin_ref[...]                                     # (2, D): [a ; b]
    out_ref[...] = _layernorm(x, fin[0:1], fin[1:2]).reshape(B, S, D)


def pack_params(layers, final):
    """Consolidate per-layer params into a few stacked arrays (done once)."""
    scale = 1.0 / math.sqrt(DK)
    w_attn, w1s, w2s, vecs, b1s = [], [], [], [], []
    for p in layers:
        # Fold the 1/sqrt(dk) attention scale into wq / bq.
        w_attn.append(jnp.concatenate(
            [p["wq"] * scale, p["wk"], p["wv"], p["wo"]], axis=1))       # (D, 4D)
        w1s.append(p["w1"])                                              # (D, DFF)
        w2s.append(p["w2"])                                              # (DFF, D)
        vecs.append(jnp.concatenate(
            [p["ln1_a"], p["ln1_b"], p["bq"] * scale, p["bk"], p["bv"],
             p["bo"], p["ln2_a"], p["ln2_b"], p["b2"]], axis=0))         # (9, D)
        b1s.append(p["b1"])                                              # (1, DFF)
    fin = jnp.concatenate([final["a"], final["b"]], axis=0)              # (2, D)
    return (jnp.stack(w_attn), jnp.stack(w1s), jnp.stack(w2s),
            jnp.stack(vecs), jnp.stack(b1s), fin)


def encoder_forward(x, mask, layers, final):
    w_attn, w1s, w2s, vecs, b1s, fin = pack_params(layers, final)
    # Single fused kernel: no grid, every operand lives whole in VMEM
    # (total footprint < 100 KiB, fine on v5e/v6e/v7x alike).
    return pl.pallas_call(
        encoder_kernel,
        out_shape=jax.ShapeDtypeStruct((B, S, D), jnp.float32),
    )(x, mask, w_attn, w1s, w2s, vecs, b1s, fin)


def init_params(key):
    def w(k, shape, scale=0.05):
        return (scale * jax.random.normal(k, shape)).astype(jnp.float32)

    layers = []
    for l in range(NLAYERS):
        ks = jax.random.split(jax.random.fold_in(key, l), 8)
        layers.append({
            "ln1_a": jnp.ones((1, D), jnp.float32),
            "ln1_b": jnp.zeros((1, D), jnp.float32),
            "wq": w(ks[0], (D, D)), "bq": jnp.zeros((1, D), jnp.float32),
            "wk": w(ks[1], (D, D)), "bk": jnp.zeros((1, D), jnp.float32),
            "wv": w(ks[2], (D, D)), "bv": jnp.zeros((1, D), jnp.float32),
            "wo": w(ks[3], (D, D)), "bo": jnp.zeros((1, D), jnp.float32),
            "ln2_a": jnp.ones((1, D), jnp.float32),
            "ln2_b": jnp.zeros((1, D), jnp.float32),
            "w1": w(ks[4], (D, DFF)), "b1": w(ks[5], (1, DFF)),
            "w2": w(ks[6], (DFF, D)), "b2": w(ks[7], (1, D)),
        })
    final = {"a": jnp.ones((1, D), jnp.float32),
             "b": jnp.zeros((1, D), jnp.float32)}
    return layers, final


def reference(x, mask, layers, final):
    def ln(y, a, b):
        mean = y.mean(-1, keepdims=True)
        var = ((y - mean) ** 2).sum(-1, keepdims=True) / (y.shape[-1] - 1)
        return a * (y - mean) / (jnp.sqrt(var) + EPS) + b

    for p in layers:
        xn = ln(x, p["ln1_a"], p["ln1_b"])
        q = (xn @ p["wq"] + p["bq"]).reshape(B, S, H, DK).transpose(0, 2, 1, 3)
        k = (xn @ p["wk"] + p["bk"]).reshape(B, S, H, DK).transpose(0, 2, 1, 3)
        v = (xn @ p["wv"] + p["bv"]).reshape(B, S, H, DK).transpose(0, 2, 1, 3)
        scores = jnp.einsum("bhqd,bhkd->bhqk", q, k) / math.sqrt(DK)
        scores = jnp.where(mask[:, None, :, :] == 0.0, -1e9, scores)
        pattn = jax.nn.softmax(scores, axis=-1)
        head = jnp.einsum("bhqk,bhkd->bhqd", pattn, v)
        head = head.transpose(0, 2, 1, 3).reshape(B, S, D)
        x = x + head @ p["wo"] + p["bo"]
        xn2 = ln(x, p["ln2_a"], p["ln2_b"])
        x = x + jnp.maximum(xn2 @ p["w1"] + p["b1"], 0.0) @ p["w2"] + p["b2"]
    return ln(x, final["a"], final["b"])


if __name__ == "__main__":
    key = jax.random.PRNGKey(0)
    kx, kp = jax.random.split(key)
    x = jax.random.normal(kx, (B, S, D), jnp.float32)

    # mask: batch 0 attends to all 8 positions, batch 1 only to the first 6.
    valid = jnp.array([S, 6])
    mask = (jnp.arange(S)[None, None, :] < valid[:, None, None]).astype(jnp.float32)
    mask = jnp.broadcast_to(mask, (B, S, S))

    layers, final = init_params(kp)

    out = encoder_forward(x, mask, layers, final)
    out = jax.block_until_ready(out)

    ref = reference(x, mask, layers, final)
    assert out.shape == (B, S, D)
    # Tolerance 1e-3 (not 1e-4): the softmax denominator uses the hardware
    # approximate reciprocal (pl.reciprocal approx=True) per the perf review.
    max_err = float(jnp.max(jnp.abs(out - ref)))
    assert jnp.allclose(out, ref, atol=1e-3, rtol=1e-3), f"mismatch vs ref (max_err={max_err})"

    print("KERNEL_OK")
</pallas_src>

<mosaic_0001>
module attributes {stable_mosaic.version = 11 : i64} {
  func.func @encoder_kernel(%arg0: memref<2x8x32xf32, #tpu.memory_space<vmem>>, %arg1: memref<2x8x8xf32, #tpu.memory_space<vmem>>, %arg2: memref<2x32x128xf32, #tpu.memory_space<vmem>>, %arg3: memref<2x32x64xf32, #tpu.memory_space<vmem>>, %arg4: memref<2x64x32xf32, #tpu.memory_space<vmem>>, %arg5: memref<2x9x32xf32, #tpu.memory_space<vmem>>, %arg6: memref<2x1x64xf32, #tpu.memory_space<vmem>>, %arg7: memref<2x32xf32, #tpu.memory_space<vmem>>, %arg8: memref<2x8x32xf32, #tpu.memory_space<vmem>>) attributes {dimension_semantics = [], scalar_prefetch = 0 : i64, scratch_operands = 0 : i64, tpu.core_type = #tpu.core_type<tc>} {
    %c0 = arith.constant 0 : index
    %c0_0 = arith.constant 0 : index
    %c0_1 = arith.constant 0 : index
    %0 = vector.load %arg0[%c0, %c0_0, %c0_1] : memref<2x8x32xf32, #tpu.memory_space<vmem>>, vector<2x8x32xf32>
    %1 = vector.shape_cast %0 : vector<2x8x32xf32> to vector<16x32xf32>
    %c0_2 = arith.constant 0 : index
    %c0_3 = arith.constant 0 : index
    %c0_4 = arith.constant 0 : index
    %2 = vector.load %arg1[%c0_2, %c0_3, %c0_4] : memref<2x8x8xf32, #tpu.memory_space<vmem>>, vector<2x8x8xf32>
    %cst = arith.constant 1.000000e+00 : f32
    %3 = vector.broadcast %cst : f32 to vector<2x8x8xf32>
    %4 = arith.subf %2, %3 : vector<2x8x8xf32>
    %cst_5 = arith.constant 1.000000e+09 : f32
    %5 = vector.broadcast %cst_5 : f32 to vector<2x8x8xf32>
    %6 = arith.mulf %4, %5 : vector<2x8x8xf32>
    %c0_6 = arith.constant 0 : index
    %c0_7 = arith.constant 0 : index
    %c0_8 = arith.constant 0 : index
    %7 = vector.load %arg5[%c0_6, %c0_7, %c0_8] : memref<2x9x32xf32, #tpu.memory_space<vmem>>, vector<1x9x32xf32>
    %8 = vector.shape_cast %7 : vector<1x9x32xf32> to vector<9x32xf32>
    %9 = vector.extract_strided_slice %8 {offsets = [0, 0], sizes = [1, 32], strides = [1, 1]} : vector<9x32xf32> to vector<1x32xf32>
    %10 = vector.extract_strided_slice %8 {offsets = [1, 0], sizes = [1, 32], strides = [1, 1]} : vector<9x32xf32> to vector<1x32xf32>
    %11 = vector.extract_strided_slice %8 {offsets = [2, 0], sizes = [1, 32], strides = [1, 1]} : vector<9x32xf32> to vector<1x32xf32>
    %12 = vector.extract_strided_slice %8 {offsets = [3, 0], sizes = [1, 32], strides = [1, 1]} : vector<9x32xf32> to vector<1x32xf32>
    %13 = vector.extract_strided_slice %8 {offsets = [4, 0], sizes = [1, 32], strides = [1, 1]} : vector<9x32xf32> to vector<1x32xf32>
    %14 = vector.extract_strided_slice %8 {offsets = [5, 0], sizes = [1, 32], strides = [1, 1]} : vector<9x32xf32> to vector<1x32xf32>
    %15 = vector.extract_strided_slice %8 {offsets = [6, 0], sizes = [1, 32], strides = [1, 1]} : vector<9x32xf32> to vector<1x32xf32>
    %16 = vector.extract_strided_slice %8 {offsets = [7, 0], sizes = [1, 32], strides = [1, 1]} : vector<9x32xf32> to vector<1x32xf32>
    %17 = vector.extract_strided_slice %8 {offsets = [8, 0], sizes = [1, 32], strides = [1, 1]} : vector<9x32xf32> to vector<1x32xf32>
    %c0_9 = arith.constant 0 : index
    %c0_10 = arith.constant 0 : index
    %c0_11 = arith.constant 0 : index
    %18 = vector.load %arg2[%c0_9, %c0_10, %c0_11] : memref<2x32x128xf32, #tpu.memory_space<vmem>>, vector<1x32x128xf32>
    %19 = vector.shape_cast %18 : vector<1x32x128xf32> to vector<32x128xf32>
    %cst_12 = arith.constant dense<0.000000e+00> : vector<16xf32>
    %20 = vector.multi_reduction <add>, %1, %cst_12 [1] : vector<16x32xf32> to vector<16xf32>
    %21 = vector.shape_cast %20 : vector<16xf32> to vector<16x1xf32>
    %cst_13 = arith.constant 3.200000e+01 : f32
    %22 = vector.broadcast %cst_13 : f32 to vector<16x1xf32>
    %23 = arith.divf %21, %22 : vector<16x1xf32>
    %24 = vector.broadcast %23 : vector<16x1xf32> to vector<16x32xf32>
    %25 = arith.subf %1, %24 : vector<16x32xf32>
    %26 = arith.mulf %25, %25 : vector<16x32xf32>
    %cst_14 = arith.constant dense<0.000000e+00> : vector<16xf32>
    %27 = vector.multi_reduction <add>, %26, %cst_14 [1] : vector<16x32xf32> to vector<16xf32>
    %28 = vector.shape_cast %27 : vector<16xf32> to vector<16x1xf32>
    %cst_15 = arith.constant 3.100000e+01 : f32
    %29 = vector.broadcast %cst_15 : f32 to vector<16x1xf32>
    %30 = arith.divf %28, %29 : vector<16x1xf32>
    %31 = math.sqrt %30 : vector<16x1xf32>
    %32 = vector.broadcast %23 : vector<16x1xf32> to vector<16x32xf32>
    %33 = arith.subf %1, %32 : vector<16x32xf32>
    %34 = vector.broadcast %9 : vector<1x32xf32> to vector<16x32xf32>
    %35 = arith.mulf %34, %33 : vector<16x32xf32>
    %cst_16 = arith.constant 9.99999997E-7 : f32
    %36 = vector.broadcast %cst_16 : f32 to vector<16x1xf32>
    %37 = arith.addf %31, %36 : vector<16x1xf32>
    %38 = vector.broadcast %37 : vector<16x1xf32> to vector<16x32xf32>
    %39 = arith.divf %35, %38 : vector<16x32xf32>
    %40 = vector.broadcast %10 : vector<1x32xf32> to vector<16x32xf32>
    %41 = arith.addf %39, %40 : vector<16x32xf32>
    %42 = vector.extract_strided_slice %19 {offsets = [0, 0], sizes = [32, 96], strides = [1, 1]} : vector<32x128xf32> to vector<32x96xf32>
    %cst_17 = arith.constant dense<0.000000e+00> : vector<16x96xf32>
    %43 = tpu.matmul %41, %42, %cst_17 {dimension_numbers = #tpu.dot_dimension_numbers<[1], [0], [0], [1], [0, 0, 1, 1], [], []>} : vector<16x32xf32>, vector<32x96xf32>, vector<16x96xf32> -> vector<16x96xf32>
    %44 = vector.extract_strided_slice %43 {offsets = [0, 0], sizes = [16, 32], strides = [1, 1]} : vector<16x96xf32> to vector<16x32xf32>
    %45 = vector.broadcast %11 : vector<1x32xf32> to vector<16x32xf32>
    %46 = arith.addf %44, %45 : vector<16x32xf32>
    %47 = vector.extract_strided_slice %43 {offsets = [0, 32], sizes = [16, 32], strides = [1, 1]} : vector<16x96xf32> to vector<16x32xf32>
    %48 = vector.broadcast %12 : vector<1x32xf32> to vector<16x32xf32>
    %49 = arith.addf %47, %48 : vector<16x32xf32>
    %50 = vector.extract_strided_slice %43 {offsets = [0, 64], sizes = [16, 32], strides = [1, 1]} : vector<16x96xf32> to vector<16x32xf32>
    %51 = vector.broadcast %13 : vector<1x32xf32> to vector<16x32xf32>
    %52 = arith.addf %50, %51 : vector<16x32xf32>
    %53 = vector.extract_strided_slice %46 {offsets = [0, 0], sizes = [16, 8], strides = [1, 1]} : vector<16x32xf32> to vector<16x8xf32>
    %54 = vector.shape_cast %53 : vector<16x8xf32> to vector<2x8x8xf32>
    %55 = vector.extract_strided_slice %49 {offsets = [0, 0], sizes = [16, 8], strides = [1, 1]} : vector<16x32xf32> to vector<16x8xf32>
    %56 = vector.shape_cast %55 : vector<16x8xf32> to vector<2x8x8xf32>
    %57 = vector.extract_strided_slice %52 {offsets = [0, 0], sizes = [16, 8], strides = [1, 1]} : vector<16x32xf32> to vector<16x8xf32>
    %58 = vector.shape_cast %57 : vector<16x8xf32> to vector<2x8x8xf32>
    "tpu.trace_start"() <{level = 10 : i32, message = "bqd,bkd->bqk"}> : () -> ()
    %cst_18 = arith.constant dense<0.000000e+00> : vector<2x8x8xf32>
    %59 = tpu.matmul %54, %56, %cst_18 {dimension_numbers = #tpu.dot_dimension_numbers<[2], [2], [1], [1], [0, 0, 0, 1, 1, 1], [0], [0]>} : vector<2x8x8xf32>, vector<2x8x8xf32>, vector<2x8x8xf32> -> vector<2x8x8xf32>
    "tpu.trace_stop"() : () -> ()
    %60 = arith.addf %59, %6 : vector<2x8x8xf32>
    %cst_19 = arith.constant dense<0xFF800000> : vector<2x8xf32>
    %61 = vector.multi_reduction <maximumf>, %60, %cst_19 [2] : vector<2x8x8xf32> to vector<2x8xf32>
    %62 = vector.shape_cast %61 : vector<2x8xf32> to vector<2x8x1xf32>
    %63 = vector.broadcast %62 : vector<2x8x1xf32> to vector<2x8x8xf32>
    %64 = arith.subf %60, %63 : vector<2x8x8xf32>
    %65 = math.exp %64 : vector<2x8x8xf32>
    %cst_20 = arith.constant dense<0.000000e+00> : vector<2x8xf32>
    %66 = vector.multi_reduction <add>, %65, %cst_20 [2] : vector<2x8x8xf32> to vector<2x8xf32>
    %67 = vector.shape_cast %66 : vector<2x8xf32> to vector<2x8x1xf32>
    %68 = tpu.reciprocal %67 {approx = true} : vector<2x8x1xf32> -> vector<2x8x1xf32>
    %69 = vector.broadcast %68 : vector<2x8x1xf32> to vector<2x8x8xf32>
    %70 = arith.mulf %65, %69 : vector<2x8x8xf32>
    "tpu.trace_start"() <{level = 10 : i32, message = "bqk,bkd->bqd"}> : () -> ()
    %cst_21 = arith.constant dense<0.000000e+00> : vector<2x8x8xf32>
    %71 = tpu.matmul %70, %58, %cst_21 {dimension_numbers = #tpu.dot_dimension_numbers<[2], [1], [1], [2], [0, 0, 0, 1, 1, 2], [0], [0]>} : vector<2x8x8xf32>, vector<2x8x8xf32>, vector<2x8x8xf32> -> vector<2x8x8xf32>
    "tpu.trace_stop"() : () -> ()
    %72 = vector.shape_cast %71 : vector<2x8x8xf32> to vector<16x8xf32>
    %73 = vector.extract_strided_slice %46 {offsets = [0, 8], sizes = [16, 8], strides = [1, 1]} : vector<16x32xf32> to vector<16x8xf32>
    %74 = vector.shape_cast %73 : vector<16x8xf32> to vector<2x8x8xf32>
    %75 = vector.extract_strided_slice %49 {offsets = [0, 8], sizes = [16, 8], strides = [1, 1]} : vector<16x32xf32> to vector<16x8xf32>
    %76 = vector.shape_cast %75 : vector<16x8xf32> to vector<2x8x8xf32>
    %77 = vector.extract_strided_slice %52 {offsets = [0, 8], sizes = [16, 8], strides = [1, 1]} : vector<16x32xf32> to vector<16x8xf32>
    %78 = vector.shape_cast %77 : vector<16x8xf32> to vector<2x8x8xf32>
    "tpu.trace_start"() <{level = 10 : i32, message = "bqd,bkd->bqk"}> : () -> ()
    %cst_22 = arith.constant dense<0.000000e+00> : vector<2x8x8xf32>
    %79 = tpu.matmul %74, %76, %cst_22 {dimension_numbers = #tpu.dot_dimension_numbers<[2], [2], [1], [1], [0, 0, 0, 1, 1, 1], [0], [0]>} : vector<2x8x8xf32>, vector<2x8x8xf32>, vector<2x8x8xf32> -> vector<2x8x8xf32>
    "tpu.trace_stop"() : () -> ()
    %80 = arith.addf %79, %6 : vector<2x8x8xf32>
    %cst_23 = arith.constant dense<0xFF800000> : vector<2x8xf32>
    %81 = vector.multi_reduction <maximumf>, %80, %cst_23 [2] : vector<2x8x8xf32> to vector<2x8xf32>
    %82 = vector.shape_cast %81 : vector<2x8xf32> to vector<2x8x1xf32>
    %83 = vector.broadcast %82 : vector<2x8x1xf32> to vector<2x8x8xf32>
    %84 = arith.subf %80, %83 : vector<2x8x8xf32>
    %85 = math.exp %84 : vector<2x8x8xf32>
    %cst_24 = arith.constant dense<0.000000e+00> : vector<2x8xf32>
    %86 = vector.multi_reduction <add>, %85, %cst_24 [2] : vector<2x8x8xf32> to vector<2x8xf32>
    %87 = vector.shape_cast %86 : vector<2x8xf32> to vector<2x8x1xf32>
    %88 = tpu.reciprocal %87 {approx = true} : vector<2x8x1xf32> -> vector<2x8x1xf32>
    %89 = vector.broadcast %88 : vector<2x8x1xf32> to vector<2x8x8xf32>
    %90 = arith.mulf %85, %89 : vector<2x8x8xf32>
    "tpu.trace_start"() <{level = 10 : i32, message = "bqk,bkd->bqd"}> : () -> ()
    %cst_25 = arith.constant dense<0.000000e+00> : vector<2x8x8xf32>
    %91 = tpu.matmul %90, %78, %cst_25 {dimension_numbers = #tpu.dot_dimension_numbers<[2], [1], [1], [2], [0, 0, 0, 1, 1, 2], [0], [0]>} : vector<2x8x8xf32>, vector<2x8x8xf32>, vector<2x8x8xf32> -> vector<2x8x8xf32>
    "tpu.trace_stop"() : () -> ()
    %92 = vector.shape_cast %91 : vector<2x8x8xf32> to vector<16x8xf32>
    %93 = vector.extract_strided_slice %46 {offsets = [0, 16], sizes = [16, 8], strides = [1, 1]} : vector<16x32xf32> to vector<16x8xf32>
    %94 = vector.shape_cast %93 : vector<16x8xf32> to vector<2x8x8xf32>
    %95 = vector.extract_strided_slice %49 {offsets = [0, 16], sizes = [16, 8], strides = [1, 1]} : vector<16x32xf32> to vector<16x8xf32>
    %96 = vector.shape_cast %95 : vector<16x8xf32> to vector<2x8x8xf32>
    %97 = vector.extract_strided_slice %52 {offsets = [0, 16], sizes = [16, 8], strides = [1, 1]} : vector<16x32xf32> to vector<16x8xf32>
    %98 = vector.shape_cast %97 : vector<16x8xf32> to vector<2x8x8xf32>
    "tpu.trace_start"() <{level = 10 : i32, message = "bqd,bkd->bqk"}> : () -> ()
    %cst_26 = arith.constant dense<0.000000e+00> : vector<2x8x8xf32>
    %99 = tpu.matmul %94, %96, %cst_26 {dimension_numbers = #tpu.dot_dimension_numbers<[2], [2], [1], [1], [0, 0, 0, 1, 1, 1], [0], [0]>} : vector<2x8x8xf32>, vector<2x8x8xf32>, vector<2x8x8xf32> -> vector<2x8x8xf32>
    "tpu.trace_stop"() : () -> ()
    %100 = arith.addf %99, %6 : vector<2x8x8xf32>
    %cst_27 = arith.constant dense<0xFF800000> : vector<2x8xf32>
    %101 = vector.multi_reduction <maximumf>, %100, %cst_27 [2] : vector<2x8x8xf32> to vector<2x8xf32>
    %102 = vector.shape_cast %101 : vector<2x8xf32> to vector<2x8x1xf32>
    %103 = vector.broadcast %102 : vector<2x8x1xf32> to vector<2x8x8xf32>
    %104 = arith.subf %100, %103 : vector<2x8x8xf32>
    %105 = math.exp %104 : vector<2x8x8xf32>
    %cst_28 = arith.constant dense<0.000000e+00> : vector<2x8xf32>
    %106 = vector.multi_reduction <add>, %105, %cst_28 [2] : vector<2x8x8xf32> to vector<2x8xf32>
    %107 = vector.shape_cast %106 : vector<2x8xf32> to vector<2x8x1xf32>
    %108 = tpu.reciprocal %107 {approx = true} : vector<2x8x1xf32> -> vector<2x8x1xf32>
    %109 = vector.broadcast %108 : vector<2x8x1xf32> to vector<2x8x8xf32>
    %110 = arith.mulf %105, %109 : vector<2x8x8xf32>
    "tpu.trace_start"() <{level = 10 : i32, message = "bqk,bkd->bqd"}> : () -> ()
    %cst_29 = arith.constant dense<0.000000e+00> : vector<2x8x8xf32>
    %111 = tpu.matmul %110, %98, %cst_29 {dimension_numbers = #tpu.dot_dimension_numbers<[2], [1], [1], [2], [0, 0, 0, 1, 1, 2], [0], [0]>} : vector<2x8x8xf32>, vector<2x8x8xf32>, vector<2x8x8xf32> -> vector<2x8x8xf32>
    "tpu.trace_stop"() : () -> ()
    %112 = vector.shape_cast %111 : vector<2x8x8xf32> to vector<16x8xf32>
    %113 = vector.extract_strided_slice %46 {offsets = [0, 24], sizes = [16, 8], strides = [1, 1]} : vector<16x32xf32> to vector<16x8xf32>
    %114 = vector.shape_cast %113 : vector<16x8xf32> to vector<2x8x8xf32>
    %115 = vector.extract_strided_slice %49 {offsets = [0, 24], sizes = [16, 8], strides = [1, 1]} : vector<16x32xf32> to vector<16x8xf32>
    %116 = vector.shape_cast %115 : vector<16x8xf32> to vector<2x8x8xf32>
    %117 = vector.extract_strided_slice %52 {offsets = [0, 24], sizes = [16, 8], strides = [1, 1]} : vector<16x32xf32> to vector<16x8xf32>
    %118 = vector.shape_cast %117 : vector<16x8xf32> to vector<2x8x8xf32>
    "tpu.trace_start"() <{level = 10 : i32, message = "bqd,bkd->bqk"}> : () -> ()
    %cst_30 = arith.constant dense<0.000000e+00> : vector<2x8x8xf32>
    %119 = tpu.matmul %114, %116, %cst_30 {dimension_numbers = #tpu.dot_dimension_numbers<[2], [2], [1], [1], [0, 0, 0, 1, 1, 1], [0], [0]>} : vector<2x8x8xf32>, vector<2x8x8xf32>, vector<2x8x8xf32> -> vector<2x8x8xf32>
    "tpu.trace_stop"() : () -> ()
    %120 = arith.addf %119, %6 : vector<2x8x8xf32>
    %cst_31 = arith.constant dense<0xFF800000> : vector<2x8xf32>
    %121 = vector.multi_reduction <maximumf>, %120, %cst_31 [2] : vector<2x8x8xf32> to vector<2x8xf32>
    %122 = vector.shape_cast %121 : vector<2x8xf32> to vector<2x8x1xf32>
    %123 = vector.broadcast %122 : vector<2x8x1xf32> to vector<2x8x8xf32>
    %124 = arith.subf %120, %123 : vector<2x8x8xf32>
    %125 = math.exp %124 : vector<2x8x8xf32>
    %cst_32 = arith.constant dense<0.000000e+00> : vector<2x8xf32>
    %126 = vector.multi_reduction <add>, %125, %cst_32 [2] : vector<2x8x8xf32> to vector<2x8xf32>
    %127 = vector.shape_cast %126 : vector<2x8xf32> to vector<2x8x1xf32>
    %128 = tpu.reciprocal %127 {approx = true} : vector<2x8x1xf32> -> vector<2x8x1xf32>
    %129 = vector.broadcast %128 : vector<2x8x1xf32> to vector<2x8x8xf32>
    %130 = arith.mulf %125, %129 : vector<2x8x8xf32>
    "tpu.trace_start"() <{level = 10 : i32, message = "bqk,bkd->bqd"}> : () -> ()
    %cst_33 = arith.constant dense<0.000000e+00> : vector<2x8x8xf32>
    %131 = tpu.matmul %130, %118, %cst_33 {dimension_numbers = #tpu.dot_dimension_numbers<[2], [1], [1], [2], [0, 0, 0, 1, 1, 2], [0], [0]>} : vector<2x8x8xf32>, vector<2x8x8xf32>, vector<2x8x8xf32> -> vector<2x8x8xf32>
    "tpu.trace_stop"() : () -> ()
    %132 = vector.shape_cast %131 : vector<2x8x8xf32> to vector<16x8xf32>
    %133 = tpu.concatenate %72, %92, %112, %132 in 1 : vector<16x8xf32>, vector<16x8xf32>, vector<16x8xf32>, vector<16x8xf32> -> vector<16x32xf32>
    %134 = vector.extract_strided_slice %19 {offsets = [0, 96], sizes = [32, 32], strides = [1, 1]} : vector<32x128xf32> to vector<32x32xf32>
    %cst_34 = arith.constant dense<0.000000e+00> : vector<16x32xf32>
    %135 = tpu.matmul %133, %134, %cst_34 {dimension_numbers = #tpu.dot_dimension_numbers<[1], [0], [0], [1], [0, 0, 1, 1], [], []>} : vector<16x32xf32>, vector<32x32xf32>, vector<16x32xf32> -> vector<16x32xf32>
    %136 = arith.addf %1, %135 : vector<16x32xf32>
    %137 = vector.broadcast %14 : vector<1x32xf32> to vector<16x32xf32>
    %138 = arith.addf %136, %137 : vector<16x32xf32>
    %cst_35 = arith.constant dense<0.000000e+00> : vector<16xf32>
    %139 = vector.multi_reduction <add>, %138, %cst_35 [1] : vector<16x32xf32> to vector<16xf32>
    %140 = vector.shape_cast %139 : vector<16xf32> to vector<16x1xf32>
    %cst_36 = arith.constant 3.200000e+01 : f32
    %141 = vector.broadcast %cst_36 : f32 to vector<16x1xf32>
    %142 = arith.divf %140, %141 : vector<16x1xf32>
    %143 = vector.broadcast %142 : vector<16x1xf32> to vector<16x32xf32>
    %144 = arith.subf %138, %143 : vector<16x32xf32>
    %145 = arith.mulf %144, %144 : vector<16x32xf32>
    %cst_37 = arith.constant dense<0.000000e+00> : vector<16xf32>
    %146 = vector.multi_reduction <add>, %145, %cst_37 [1] : vector<16x32xf32> to vector<16xf32>
    %147 = vector.shape_cast %146 : vector<16xf32> to vector<16x1xf32>
    %cst_38 = arith.constant 3.100000e+01 : f32
    %148 = vector.broadcast %cst_38 : f32 to vector<16x1xf32>
    %149 = arith.divf %147, %148 : vector<16x1xf32>
    %150 = math.sqrt %149 : vector<16x1xf32>
    %151 = vector.broadcast %142 : vector<16x1xf32> to vector<16x32xf32>
    %152 = arith.subf %138, %151 : vector<16x32xf32>
    %153 = vector.broadcast %15 : vector<1x32xf32> to vector<16x32xf32>
    %154 = arith.mulf %153, %152 : vector<16x32xf32>
    %cst_39 = arith.constant 9.99999997E-7 : f32
    %155 = vector.broadcast %cst_39 : f32 to vector<16x1xf32>
    %156 = arith.addf %150, %155 : vector<16x1xf32>
    %157 = vector.broadcast %156 : vector<16x1xf32> to vector<16x32xf32>
    %158 = arith.divf %154, %157 : vector<16x32xf32>
    %159 = vector.broadcast %16 : vector<1x32xf32> to vector<16x32xf32>
    %160 = arith.addf %158, %159 : vector<16x32xf32>
    %c0_40 = arith.constant 0 : index
    %c0_41 = arith.constant 0 : index
    %c0_42 = arith.constant 0 : index
    %161 = vector.load %arg3[%c0_40, %c0_41, %c0_42] : memref<2x32x64xf32, #tpu.memory_space<vmem>>, vector<1x32x64xf32>
    %162 = vector.shape_cast %161 : vector<1x32x64xf32> to vector<32x64xf32>
    %cst_43 = arith.constant dense<0.000000e+00> : vector<16x64xf32>
    %163 = tpu.matmul %160, %162, %cst_43 {dimension_numbers = #tpu.dot_dimension_numbers<[1], [0], [0], [1], [0, 0, 1, 1], [], []>} : vector<16x32xf32>, vector<32x64xf32>, vector<16x64xf32> -> vector<16x64xf32>
    %c0_44 = arith.constant 0 : index
    %c0_45 = arith.constant 0 : index
    %c0_46 = arith.constant 0 : index
    %164 = vector.load %arg6[%c0_44, %c0_45, %c0_46] : memref<2x1x64xf32, #tpu.memory_space<vmem>>, vector<1x1x64xf32>
    %165 = vector.shape_cast %164 : vector<1x1x64xf32> to vector<1x64xf32>
    %166 = vector.broadcast %165 : vector<1x64xf32> to vector<16x64xf32>
    %167 = arith.addf %163, %166 : vector<16x64xf32>
    %cst_47 = arith.constant 0.000000e+00 : f32
    %168 = vector.broadcast %cst_47 : f32 to vector<16x64xf32>
    %169 = arith.maximumf %167, %168 : vector<16x64xf32>
    %c0_48 = arith.constant 0 : index
    %c0_49 = arith.constant 0 : index
    %c0_50 = arith.constant 0 : index
    %170 = vector.load %arg4[%c0_48, %c0_49, %c0_50] : memref<2x64x32xf32, #tpu.memory_space<vmem>>, vector<1x64x32xf32>
    %171 = vector.shape_cast %170 : vector<1x64x32xf32> to vector<64x32xf32>
    %cst_51 = arith.constant dense<0.000000e+00> : vector<16x32xf32>
    %172 = tpu.matmul %169, %171, %cst_51 {dimension_numbers = #tpu.dot_dimension_numbers<[1], [0], [0], [1], [0, 0, 1, 1], [], []>} : vector<16x64xf32>, vector<64x32xf32>, vector<16x32xf32> -> vector<16x32xf32>
    %173 = arith.addf %138, %172 : vector<16x32xf32>
    %174 = vector.broadcast %17 : vector<1x32xf32> to vector<16x32xf32>
    %175 = arith.addf %173, %174 : vector<16x32xf32>
    %c1 = arith.constant 1 : index
    %c0_52 = arith.constant 0 : index
    %c0_53 = arith.constant 0 : index
    %176 = vector.load %arg5[%c1, %c0_52, %c0_53] : memref<2x9x32xf32, #tpu.memory_space<vmem>>, vector<1x9x32xf32>
    %177 = vector.shape_cast %176 : vector<1x9x32xf32> to vector<9x32xf32>
    %178 = vector.extract_strided_slice %177 {offsets = [0, 0], sizes = [1, 32], strides = [1, 1]} : vector<9x32xf32> to vector<1x32xf32>
    %179 = vector.extract_strided_slice %177 {offsets = [1, 0], sizes = [1, 32], strides = [1, 1]} : vector<9x32xf32> to vector<1x32xf32>
    %180 = vector.extract_strided_slice %177 {offsets = [2, 0], sizes = [1, 32], strides = [1, 1]} : vector<9x32xf32> to vector<1x32xf32>
    %181 = vector.extract_strided_slice %177 {offsets = [3, 0], sizes = [1, 32], strides = [1, 1]} : vector<9x32xf32> to vector<1x32xf32>
    %182 = vector.extract_strided_slice %177 {offsets = [4, 0], sizes = [1, 32], strides = [1, 1]} : vector<9x32xf32> to vector<1x32xf32>
    %183 = vector.extract_strided_slice %177 {offsets = [5, 0], sizes = [1, 32], strides = [1, 1]} : vector<9x32xf32> to vector<1x32xf32>
    %184 = vector.extract_strided_slice %177 {offsets = [6, 0], sizes = [1, 32], strides = [1, 1]} : vector<9x32xf32> to vector<1x32xf32>
    %185 = vector.extract_strided_slice %177 {offsets = [7, 0], sizes = [1, 32], strides = [1, 1]} : vector<9x32xf32> to vector<1x32xf32>
    %186 = vector.extract_strided_slice %177 {offsets = [8, 0], sizes = [1, 32], strides = [1, 1]} : vector<9x32xf32> to vector<1x32xf32>
    %c1_54 = arith.constant 1 : index
    %c0_55 = arith.constant 0 : index
    %c0_56 = arith.constant 0 : index
    %187 = vector.load %arg2[%c1_54, %c0_55, %c0_56] : memref<2x32x128xf32, #tpu.memory_space<vmem>>, vector<1x32x128xf32>
    %188 = vector.shape_cast %187 : vector<1x32x128xf32> to vector<32x128xf32>
    %cst_57 = arith.constant dense<0.000000e+00> : vector<16xf32>
    %189 = vector.multi_reduction <add>, %175, %cst_57 [1] : vector<16x32xf32> to vector<16xf32>
    %190 = vector.shape_cast %189 : vector<16xf32> to vector<16x1xf32>
    %cst_58 = arith.constant 3.200000e+01 : f32
    %191 = vector.broadcast %cst_58 : f32 to vector<16x1xf32>
    %192 = arith.divf %190, %191 : vector<16x1xf32>
    %193 = vector.broadcast %192 : vector<16x1xf32> to vector<16x32xf32>
    %194 = arith.subf %175, %193 : vector<16x32xf32>
    %195 = arith.mulf %194, %194 : vector<16x32xf32>
    %cst_59 = arith.constant dense<0.000000e+00> : vector<16xf32>
    %196 = vector.multi_reduction <add>, %195, %cst_59 [1] : vector<16x32xf32> to vector<16xf32>
    %197 = vector.shape_cast %196 : vector<16xf32> to vector<16x1xf32>
    %cst_60 = arith.constant 3.100000e+01 : f32
    %198 = vector.broadcast %cst_60 : f32 to vector<16x1xf32>
    %199 = arith.divf %197, %198 : vector<16x1xf32>
    %200 = math.sqrt %199 : vector<16x1xf32>
    %201 = vector.broadcast %192 : vector<16x1xf32> to vector<16x32xf32>
    %202 = arith.subf %175, %201 : vector<16x32xf32>
    %203 = vector.broadcast %178 : vector<1x32xf32> to vector<16x32xf32>
    %204 = arith.mulf %203, %202 : vector<16x32xf32>
    %cst_61 = arith.constant 9.99999997E-7 : f32
    %205 = vector.broadcast %cst_61 : f32 to vector<16x1xf32>
    %206 = arith.addf %200, %205 : vector<16x1xf32>
    %207 = vector.broadcast %206 : vector<16x1xf32> to vector<16x32xf32>
    %208 = arith.divf %204, %207 : vector<16x32xf32>
    %209 = vector.broadcast %179 : vector<1x32xf32> to vector<16x32xf32>
    %210 = arith.addf %208, %209 : vector<16x32xf32>
    %211 = vector.extract_strided_slice %188 {offsets = [0, 0], sizes = [32, 96], strides = [1, 1]} : vector<32x128xf32> to vector<32x96xf32>
    %cst_62 = arith.constant dense<0.000000e+00> : vector<16x96xf32>
    %212 = tpu.matmul %210, %211, %cst_62 {dimension_numbers = #tpu.dot_dimension_numbers<[1], [0], [0], [1], [0, 0, 1, 1], [], []>} : vector<16x32xf32>, vector<32x96xf32>, vector<16x96xf32> -> vector<16x96xf32>
    %213 = vector.extract_strided_slice %212 {offsets = [0, 0], sizes = [16, 32], strides = [1, 1]} : vector<16x96xf32> to vector<16x32xf32>
    %214 = vector.broadcast %180 : vector<1x32xf32> to vector<16x32xf32>
    %215 = arith.addf %213, %214 : vector<16x32xf32>
    %216 = vector.extract_strided_slice %212 {offsets = [0, 32], sizes = [16, 32], strides = [1, 1]} : vector<16x96xf32> to vector<16x32xf32>
    %217 = vector.broadcast %181 : vector<1x32xf32> to vector<16x32xf32>
    %218 = arith.addf %216, %217 : vector<16x32xf32>
    %219 = vector.extract_strided_slice %212 {offsets = [0, 64], sizes = [16, 32], strides = [1, 1]} : vector<16x96xf32> to vector<16x32xf32>
    %220 = vector.broadcast %182 : vector<1x32xf32> to vector<16x32xf32>
    %221 = arith.addf %219, %220 : vector<16x32xf32>
    %222 = vector.extract_strided_slice %215 {offsets = [0, 0], sizes = [16, 8], strides = [1, 1]} : vector<16x32xf32> to vector<16x8xf32>
    %223 = vector.shape_cast %222 : vector<16x8xf32> to vector<2x8x8xf32>
    %224 = vector.extract_strided_slice %218 {offsets = [0, 0], sizes = [16, 8], strides = [1, 1]} : vector<16x32xf32> to vector<16x8xf32>
    %225 = vector.shape_cast %224 : vector<16x8xf32> to vector<2x8x8xf32>
    %226 = vector.extract_strided_slice %221 {offsets = [0, 0], sizes = [16, 8], strides = [1, 1]} : vector<16x32xf32> to vector<16x8xf32>
    %227 = vector.shape_cast %226 : vector<16x8xf32> to vector<2x8x8xf32>
    "tpu.trace_start"() <{level = 10 : i32, message = "bqd,bkd->bqk"}> : () -> ()
    %cst_63 = arith.constant dense<0.000000e+00> : vector<2x8x8xf32>
    %228 = tpu.matmul %223, %225, %cst_63 {dimension_numbers = #tpu.dot_dimension_numbers<[2], [2], [1], [1], [0, 0, 0, 1, 1, 1], [0], [0]>} : vector<2x8x8xf32>, vector<2x8x8xf32>, vector<2x8x8xf32> -> vector<2x8x8xf32>
    "tpu.trace_stop"() : () -> ()
    %229 = arith.addf %228, %6 : vector<2x8x8xf32>
    %cst_64 = arith.constant dense<0xFF800000> : vector<2x8xf32>
    %230 = vector.multi_reduction <maximumf>, %229, %cst_64 [2] : vector<2x8x8xf32> to vector<2x8xf32>
    %231 = vector.shape_cast %230 : vector<2x8xf32> to vector<2x8x1xf32>
    %232 = vector.broadcast %231 : vector<2x8x1xf32> to vector<2x8x8xf32>
    %233 = arith.subf %229, %232 : vector<2x8x8xf32>
    %234 = math.exp %233 : vector<2x8x8xf32>
    %cst_65 = arith.constant dense<0.000000e+00> : vector<2x8xf32>
    %235 = vector.multi_reduction <add>, %234, %cst_65 [2] : vector<2x8x8xf32> to vector<2x8xf32>
    %236 = vector.shape_cast %235 : vector<2x8xf32> to vector<2x8x1xf32>
    %237 = tpu.reciprocal %236 {approx = true} : vector<2x8x1xf32> -> vector<2x8x1xf32>
    %238 = vector.broadcast %237 : vector<2x8x1xf32> to vector<2x8x8xf32>
    %239 = arith.mulf %234, %238 : vector<2x8x8xf32>
    "tpu.trace_start"() <{level = 10 : i32, message = "bqk,bkd->bqd"}> : () -> ()
    %cst_66 = arith.constant dense<0.000000e+00> : vector<2x8x8xf32>
    %240 = tpu.matmul %239, %227, %cst_66 {dimension_numbers = #tpu.dot_dimension_numbers<[2], [1], [1], [2], [0, 0, 0, 1, 1, 2], [0], [0]>} : vector<2x8x8xf32>, vector<2x8x8xf32>, vector<2x8x8xf32> -> vector<2x8x8xf32>
    "tpu.trace_stop"() : () -> ()
    %241 = vector.shape_cast %240 : vector<2x8x8xf32> to vector<16x8xf32>
    %242 = vector.extract_strided_slice %215 {offsets = [0, 8], sizes = [16, 8], strides = [1, 1]} : vector<16x32xf32> to vector<16x8xf32>
    %243 = vector.shape_cast %242 : vector<16x8xf32> to vector<2x8x8xf32>
    %244 = vector.extract_strided_slice %218 {offsets = [0, 8], sizes = [16, 8], strides = [1, 1]} : vector<16x32xf32> to vector<16x8xf32>
    %245 = vector.shape_cast %244 : vector<16x8xf32> to vector<2x8x8xf32>
    %246 = vector.extract_strided_slice %221 {offsets = [0, 8], sizes = [16, 8], strides = [1, 1]} : vector<16x32xf32> to vector<16x8xf32>
    %247 = vector.shape_cast %246 : vector<16x8xf32> to vector<2x8x8xf32>
    "tpu.trace_start"() <{level = 10 : i32, message = "bqd,bkd->bqk"}> : () -> ()
    %cst_67 = arith.constant dense<0.000000e+00> : vector<2x8x8xf32>
    %248 = tpu.matmul %243, %245, %cst_67 {dimension_numbers = #tpu.dot_dimension_numbers<[2], [2], [1], [1], [0, 0, 0, 1, 1, 1], [0], [0]>} : vector<2x8x8xf32>, vector<2x8x8xf32>, vector<2x8x8xf32> -> vector<2x8x8xf32>
    "tpu.trace_stop"() : () -> ()
    %249 = arith.addf %248, %6 : vector<2x8x8xf32>
    %cst_68 = arith.constant dense<0xFF800000> : vector<2x8xf32>
    %250 = vector.multi_reduction <maximumf>, %249, %cst_68 [2] : vector<2x8x8xf32> to vector<2x8xf32>
    %251 = vector.shape_cast %250 : vector<2x8xf32> to vector<2x8x1xf32>
    %252 = vector.broadcast %251 : vector<2x8x1xf32> to vector<2x8x8xf32>
    %253 = arith.subf %249, %252 : vector<2x8x8xf32>
    %254 = math.exp %253 : vector<2x8x8xf32>
    %cst_69 = arith.constant dense<0.000000e+00> : vector<2x8xf32>
    %255 = vector.multi_reduction <add>, %254, %cst_69 [2] : vector<2x8x8xf32> to vector<2x8xf32>
    %256 = vector.shape_cast %255 : vector<2x8xf32> to vector<2x8x1xf32>
    %257 = tpu.reciprocal %256 {approx = true} : vector<2x8x1xf32> -> vector<2x8x1xf32>
    %258 = vector.broadcast %257 : vector<2x8x1xf32> to vector<2x8x8xf32>
    %259 = arith.mulf %254, %258 : vector<2x8x8xf32>
    "tpu.trace_start"() <{level = 10 : i32, message = "bqk,bkd->bqd"}> : () -> ()
    %cst_70 = arith.constant dense<0.000000e+00> : vector<2x8x8xf32>
    %260 = tpu.matmul %259, %247, %cst_70 {dimension_numbers = #tpu.dot_dimension_numbers<[2], [1], [1], [2], [0, 0, 0, 1, 1, 2], [0], [0]>} : vector<2x8x8xf32>, vector<2x8x8xf32>, vector<2x8x8xf32> -> vector<2x8x8xf32>
    "tpu.trace_stop"() : () -> ()
    %261 = vector.shape_cast %260 : vector<2x8x8xf32> to vector<16x8xf32>
    %262 = vector.extract_strided_slice %215 {offsets = [0, 16], sizes = [16, 8], strides = [1, 1]} : vector<16x32xf32> to vector<16x8xf32>
    %263 = vector.shape_cast %262 : vector<16x8xf32> to vector<2x8x8xf32>
    %264 = vector.extract_strided_slice %218 {offsets = [0, 16], sizes = [16, 8], strides = [1, 1]} : vector<16x32xf32> to vector<16x8xf32>
    %265 = vector.shape_cast %264 : vector<16x8xf32> to vector<2x8x8xf32>
    %266 = vector.extract_strided_slice %221 {offsets = [0, 16], sizes = [16, 8], strides = [1, 1]} : vector<16x32xf32> to vector<16x8xf32>
    %267 = vector.shape_cast %266 : vector<16x8xf32> to vector<2x8x8xf32>
    "tpu.trace_start"() <{level = 10 : i32, message = "bqd,bkd->bqk"}> : () -> ()
    %cst_71 = arith.constant dense<0.000000e+00> : vector<2x8x8xf32>
    %268 = tpu.matmul %263, %265, %cst_71 {dimension_numbers = #tpu.dot_dimension_numbers<[2], [2], [1], [1], [0, 0, 0, 1, 1, 1], [0], [0]>} : vector<2x8x8xf32>, vector<2x8x8xf32>, vector<2x8x8xf32> -> vector<2x8x8xf32>
    "tpu.trace_stop"() : () -> ()
    %269 = arith.addf %268, %6 : vector<2x8x8xf32>
    %cst_72 = arith.constant dense<0xFF800000> : vector<2x8xf32>
    %270 = vector.multi_reduction <maximumf>, %269, %cst_72 [2] : vector<2x8x8xf32> to vector<2x8xf32>
    %271 = vector.shape_cast %270 : vector<2x8xf32> to vector<2x8x1xf32>
    %272 = vector.broadcast %271 : vector<2x8x1xf32> to vector<2x8x8xf32>
    %273 = arith.subf %269, %272 : vector<2x8x8xf32>
    %274 = math.exp %273 : vector<2x8x8xf32>
    %cst_73 = arith.constant dense<0.000000e+00> : vector<2x8xf32>
    %275 = vector.multi_reduction <add>, %274, %cst_73 [2] : vector<2x8x8xf32> to vector<2x8xf32>
    %276 = vector.shape_cast %275 : vector<2x8xf32> to vector<2x8x1xf32>
    %277 = tpu.reciprocal %276 {approx = true} : vector<2x8x1xf32> -> vector<2x8x1xf32>
    %278 = vector.broadcast %277 : vector<2x8x1xf32> to vector<2x8x8xf32>
    %279 = arith.mulf %274, %278 : vector<2x8x8xf32>
    "tpu.trace_start"() <{level = 10 : i32, message = "bqk,bkd->bqd"}> : () -> ()
    %cst_74 = arith.constant dense<0.000000e+00> : vector<2x8x8xf32>
    %280 = tpu.matmul %279, %267, %cst_74 {dimension_numbers = #tpu.dot_dimension_numbers<[2], [1], [1], [2], [0, 0, 0, 1, 1, 2], [0], [0]>} : vector<2x8x8xf32>, vector<2x8x8xf32>, vector<2x8x8xf32> -> vector<2x8x8xf32>
    "tpu.trace_stop"() : () -> ()
    %281 = vector.shape_cast %280 : vector<2x8x8xf32> to vector<16x8xf32>
    %282 = vector.extract_strided_slice %215 {offsets = [0, 24], sizes = [16, 8], strides = [1, 1]} : vector<16x32xf32> to vector<16x8xf32>
    %283 = vector.shape_cast %282 : vector<16x8xf32> to vector<2x8x8xf32>
    %284 = vector.extract_strided_slice %218 {offsets = [0, 24], sizes = [16, 8], strides = [1, 1]} : vector<16x32xf32> to vector<16x8xf32>
    %285 = vector.shape_cast %284 : vector<16x8xf32> to vector<2x8x8xf32>
    %286 = vector.extract_strided_slice %221 {offsets = [0, 24], sizes = [16, 8], strides = [1, 1]} : vector<16x32xf32> to vector<16x8xf32>
    %287 = vector.shape_cast %286 : vector<16x8xf32> to vector<2x8x8xf32>
    "tpu.trace_start"() <{level = 10 : i32, message = "bqd,bkd->bqk"}> : () -> ()
    %cst_75 = arith.constant dense<0.000000e+00> : vector<2x8x8xf32>
    %288 = tpu.matmul %283, %285, %cst_75 {dimension_numbers = #tpu.dot_dimension_numbers<[2], [2], [1], [1], [0, 0, 0, 1, 1, 1], [0], [0]>} : vector<2x8x8xf32>, vector<2x8x8xf32>, vector<2x8x8xf32> -> vector<2x8x8xf32>
    "tpu.trace_stop"() : () -> ()
    %289 = arith.addf %288, %6 : vector<2x8x8xf32>
    %cst_76 = arith.constant dense<0xFF800000> : vector<2x8xf32>
    %290 = vector.multi_reduction <maximumf>, %289, %cst_76 [2] : vector<2x8x8xf32> to vector<2x8xf32>
    %291 = vector.shape_cast %290 : vector<2x8xf32> to vector<2x8x1xf32>
    %292 = vector.broadcast %291 : vector<2x8x1xf32> to vector<2x8x8xf32>
    %293 = arith.subf %289, %292 : vector<2x8x8xf32>
    %294 = math.exp %293 : vector<2x8x8xf32>
    %cst_77 = arith.constant dense<0.000000e+00> : vector<2x8xf32>
    %295 = vector.multi_reduction <add>, %294, %cst_77 [2] : vector<2x8x8xf32> to vector<2x8xf32>
    %296 = vector.shape_cast %295 : vector<2x8xf32> to vector<2x8x1xf32>
    %297 = tpu.reciprocal %296 {approx = true} : vector<2x8x1xf32> -> vector<2x8x1xf32>
    %298 = vector.broadcast %297 : vector<2x8x1xf32> to vector<2x8x8xf32>
    %299 = arith.mulf %294, %298 : vector<2x8x8xf32>
    "tpu.trace_start"() <{level = 10 : i32, message = "bqk,bkd->bqd"}> : () -> ()
    %cst_78 = arith.constant dense<0.000000e+00> : vector<2x8x8xf32>
    %300 = tpu.matmul %299, %287, %cst_78 {dimension_numbers = #tpu.dot_dimension_numbers<[2], [1], [1], [2], [0, 0, 0, 1, 1, 2], [0], [0]>} : vector<2x8x8xf32>, vector<2x8x8xf32>, vector<2x8x8xf32> -> vector<2x8x8xf32>
    "tpu.trace_stop"() : () -> ()
    %301 = vector.shape_cast %300 : vector<2x8x8xf32> to vector<16x8xf32>
    %302 = tpu.concatenate %241, %261, %281, %301 in 1 : vector<16x8xf32>, vector<16x8xf32>, vector<16x8xf32>, vector<16x8xf32> -> vector<16x32xf32>
    %303 = vector.extract_strided_slice %188 {offsets = [0, 96], sizes = [32, 32], strides = [1, 1]} : vector<32x128xf32> to vector<32x32xf32>
    %cst_79 = arith.constant dense<0.000000e+00> : vector<16x32xf32>
    %304 = tpu.matmul %302, %303, %cst_79 {dimension_numbers = #tpu.dot_dimension_numbers<[1], [0], [0], [1], [0, 0, 1, 1], [], []>} : vector<16x32xf32>, vector<32x32xf32>, vector<16x32xf32> -> vector<16x32xf32>
    %305 = arith.addf %175, %304 : vector<16x32xf32>
    %306 = vector.broadcast %183 : vector<1x32xf32> to vector<16x32xf32>
    %307 = arith.addf %305, %306 : vector<16x32xf32>
    %cst_80 = arith.constant dense<0.000000e+00> : vector<16xf32>
    %308 = vector.multi_reduction <add>, %307, %cst_80 [1] : vector<16x32xf32> to vector<16xf32>
    %309 = vector.shape_cast %308 : vector<16xf32> to vector<16x1xf32>
    %cst_81 = arith.constant 3.200000e+01 : f32
    %310 = vector.broadcast %cst_81 : f32 to vector<16x1xf32>
    %311 = arith.divf %309, %310 : vector<16x1xf32>
    %312 = vector.broadcast %311 : vector<16x1xf32> to vector<16x32xf32>
    %313 = arith.subf %307, %312 : vector<16x32xf32>
    %314 = arith.mulf %313, %313 : vector<16x32xf32>
    %cst_82 = arith.constant dense<0.000000e+00> : vector<16xf32>
    %315 = vector.multi_reduction <add>, %314, %cst_82 [1] : vector<16x32xf32> to vector<16xf32>
    %316 = vector.shape_cast %315 : vector<16xf32> to vector<16x1xf32>
    %cst_83 = arith.constant 3.100000e+01 : f32
    %317 = vector.broadcast %cst_83 : f32 to vector<16x1xf32>
    %318 = arith.divf %316, %317 : vector<16x1xf32>
    %319 = math.sqrt %318 : vector<16x1xf32>
    %320 = vector.broadcast %311 : vector<16x1xf32> to vector<16x32xf32>
    %321 = arith.subf %307, %320 : vector<16x32xf32>
    %322 = vector.broadcast %184 : vector<1x32xf32> to vector<16x32xf32>
    %323 = arith.mulf %322, %321 : vector<16x32xf32>
    %cst_84 = arith.constant 9.99999997E-7 : f32
    %324 = vector.broadcast %cst_84 : f32 to vector<16x1xf32>
    %325 = arith.addf %319, %324 : vector<16x1xf32>
    %326 = vector.broadcast %325 : vector<16x1xf32> to vector<16x32xf32>
    %327 = arith.divf %323, %326 : vector<16x32xf32>
    %328 = vector.broadcast %185 : vector<1x32xf32> to vector<16x32xf32>
    %329 = arith.addf %327, %328 : vector<16x32xf32>
    %c1_85 = arith.constant 1 : index
    %c0_86 = arith.constant 0 : index
    %c0_87 = arith.constant 0 : index
    %330 = vector.load %arg3[%c1_85, %c0_86, %c0_87] : memref<2x32x64xf32, #tpu.memory_space<vmem>>, vector<1x32x64xf32>
    %331 = vector.shape_cast %330 : vector<1x32x64xf32> to vector<32x64xf32>
    %cst_88 = arith.constant dense<0.000000e+00> : vector<16x64xf32>
    %332 = tpu.matmul %329, %331, %cst_88 {dimension_numbers = #tpu.dot_dimension_numbers<[1], [0], [0], [1], [0, 0, 1, 1], [], []>} : vector<16x32xf32>, vector<32x64xf32>, vector<16x64xf32> -> vector<16x64xf32>
    %c1_89 = arith.constant 1 : index
    %c0_90 = arith.constant 0 : index
    %c0_91 = arith.constant 0 : index
    %333 = vector.load %arg6[%c1_89, %c0_90, %c0_91] : memref<2x1x64xf32, #tpu.memory_space<vmem>>, vector<1x1x64xf32>
    %334 = vector.shape_cast %333 : vector<1x1x64xf32> to vector<1x64xf32>
    %335 = vector.broadcast %334 : vector<1x64xf32> to vector<16x64xf32>
    %336 = arith.addf %332, %335 : vector<16x64xf32>
    %cst_92 = arith.constant 0.000000e+00 : f32
    %337 = vector.broadcast %cst_92 : f32 to vector<16x64xf32>
    %338 = arith.maximumf %336, %337 : vector<16x64xf32>
    %c1_93 = arith.constant 1 : index
    %c0_94 = arith.constant 0 : index
    %c0_95 = arith.constant 0 : index
    %339 = vector.load %arg4[%c1_93, %c0_94, %c0_95] : memref<2x64x32xf32, #tpu.memory_space<vmem>>, vector<1x64x32xf32>
    %340 = vector.shape_cast %339 : vector<1x64x32xf32> to vector<64x32xf32>
    %cst_96 = arith.constant dense<0.000000e+00> : vector<16x32xf32>
    %341 = tpu.matmul %338, %340, %cst_96 {dimension_numbers = #tpu.dot_dimension_numbers<[1], [0], [0], [1], [0, 0, 1, 1], [], []>} : vector<16x64xf32>, vector<64x32xf32>, vector<16x32xf32> -> vector<16x32xf32>
    %342 = arith.addf %307, %341 : vector<16x32xf32>
    %343 = vector.broadcast %186 : vector<1x32xf32> to vector<16x32xf32>
    %344 = arith.addf %342, %343 : vector<16x32xf32>
    %c0_97 = arith.constant 0 : index
    %c0_98 = arith.constant 0 : index
    %345 = vector.load %arg7[%c0_97, %c0_98] : memref<2x32xf32, #tpu.memory_space<vmem>>, vector<2x32xf32>
    %346 = vector.extract_strided_slice %345 {offsets = [0, 0], sizes = [1, 32], strides = [1, 1]} : vector<2x32xf32> to vector<1x32xf32>
    %347 = vector.extract_strided_slice %345 {offsets = [1, 0], sizes = [1, 32], strides = [1, 1]} : vector<2x32xf32> to vector<1x32xf32>
    %cst_99 = arith.constant dense<0.000000e+00> : vector<16xf32>
    %348 = vector.multi_reduction <add>, %344, %cst_99 [1] : vector<16x32xf32> to vector<16xf32>
    %349 = vector.shape_cast %348 : vector<16xf32> to vector<16x1xf32>
    %cst_100 = arith.constant 3.200000e+01 : f32
    %350 = vector.broadcast %cst_100 : f32 to vector<16x1xf32>
    %351 = arith.divf %349, %350 : vector<16x1xf32>
    %352 = vector.broadcast %351 : vector<16x1xf32> to vector<16x32xf32>
    %353 = arith.subf %344, %352 : vector<16x32xf32>
    %354 = arith.mulf %353, %353 : vector<16x32xf32>
    %cst_101 = arith.constant dense<0.000000e+00> : vector<16xf32>
    %355 = vector.multi_reduction <add>, %354, %cst_101 [1] : vector<16x32xf32> to vector<16xf32>
    %356 = vector.shape_cast %355 : vector<16xf32> to vector<16x1xf32>
    %cst_102 = arith.constant 3.100000e+01 : f32
    %357 = vector.broadcast %cst_102 : f32 to vector<16x1xf32>
    %358 = arith.divf %356, %357 : vector<16x1xf32>
    %359 = math.sqrt %358 : vector<16x1xf32>
    %360 = vector.broadcast %351 : vector<16x1xf32> to vector<16x32xf32>
    %361 = arith.subf %344, %360 : vector<16x32xf32>
    %362 = vector.broadcast %346 : vector<1x32xf32> to vector<16x32xf32>
    %363 = arith.mulf %362, %361 : vector<16x32xf32>
    %cst_103 = arith.constant 9.99999997E-7 : f32
    %364 = vector.broadcast %cst_103 : f32 to vector<16x1xf32>
    %365 = arith.addf %359, %364 : vector<16x1xf32>
    %366 = vector.broadcast %365 : vector<16x1xf32> to vector<16x32xf32>
    %367 = arith.divf %363, %366 : vector<16x32xf32>
    %368 = vector.broadcast %347 : vector<1x32xf32> to vector<16x32xf32>
    %369 = arith.addf %367, %368 : vector<16x32xf32>
    %370 = vector.shape_cast %369 : vector<16x32xf32> to vector<2x8x32xf32>
    %c0_104 = arith.constant 0 : index
    %c0_105 = arith.constant 0 : index
    %c0_106 = arith.constant 0 : index
    %371 = vector.load %arg8[%c0_104, %c0_105, %c0_106] : memref<2x8x32xf32, #tpu.memory_space<vmem>>, vector<2x8x32xf32>
    tpu.vector_store %arg8[%c0_104, %c0_105, %c0_106], %370 {strides = array<i32>} : memref<2x8x32xf32, #tpu.memory_space<vmem>>, vector<2x8x32xf32>,
    return
  }
}

</mosaic_0001>

<bundles_post_ra>
// kernel: tpu_custom_call.1
= control target key start
LH: loop header
LB: loop body
LE: loop exit
PB: predicated region body
PF: predicated region fallthrough
CT: control target
= control target key end

     0   :  { %vm44_vm0 = vcmask 261120   ;;  %s5225_s0 = inlined_call_operand.vmem [shape: f32[2,8,32], index: 0, kind: input, shape index: {}]   ;;  %s5226_s1 = inlined_call_operand.vmem [shape: f32[2,8,8], index: 1, kind: input, shape index: {}]   ;;  %s5227_s2 = inlined_call_operand.vmem [shape: f32[2,32,128], index: 2, kind: input, shape index: {}]   ;;  %s5228_s3 = inlined_call_operand.vmem [shape: f32[2,32,64], index: 3, kind: input, shape index: {}]   ;;  %s5229_s4 = inlined_call_operand.vmem [shape: f32[2,64,32], index: 4, kind: input, shape index: {}]   ;;  %s5230_s5 = inlined_call_operand.vmem [shape: f32[2,9,32], index: 5, kind: input, shape index: {}]   ;;  %s5231_s6 = inlined_call_operand.vmem [shape: f32[2,1,64], index: 6, kind: input, shape index: {}]   ;;  %s5232_s7 = inlined_call_operand.vmem [shape: f32[2,32], index: 7, kind: input, shape index: {}]   ;;  %s5233_s8 = inlined_call_operand.hbm [shape: f32[2,8,32], index: 8, kind: output, shape index: {}]  }
   0x1   :  { %v4536_v0 = vld [vmem:[%s5225_s0] sm:$0xff]  ;;  %v4541_v1 = vld [vmem:[%s5225_s0 + $0x8] sm:$0xff] }
   0x2   :  { %13 = vsyncpa [#allocation3], 0  ;;  %v45_v2 = vsel %vm44_vm0, %v4536_v0, 0.0  ;;  %v48_v3 = vsel %vm44_vm0, %v4541_v1, 0.0  ;;  %v4554_v14 = vld [vmem:[%s5227_s2 + $0x18] sm:$0xff]  ;;  %v4559_v15 = vld [vmem:[%s5227_s2 + $0x10] sm:$0xff]  ;;  %v81_v17 = vlaneseq }
   0x3   :  { %46 = vadd.xlane.f32.xlu0 %v45_v2  ;;  %4060 = vmatprep.subr.mxu1 %v4554_v14  ;;  %v4566_v16 = vld [vmem:[%s5227_s2 + $0x8] sm:$0xff]  ;;  %v4575_v18 = vld [vmem:[%s5227_s2] sm:$0xff]  ;;  %s4469_s18 = smov 32   ;;  %v4470_v51 = vmov 0.0   ;;  %vm4471_vm5 = vmmov 0   ;;  %s4472_s19 = smov 96  }
   0x4   :  { %4061 = vmatpush3.msra.mxu1 %v4554_v14  ;;  %v4577_v19 = vshrl.u32 %v81_v17, 7  ;;  %v4585_v21 = vld [vmem:[%s5230_s5] sm:$0xff]  ;;  %4081 = vmatprep.subr.mxu0 %v4470_v51  ;;  %vm209_vm6 = vcmask 64512   ;;  %s4474_s24 = smov 88   ;;  %s4475_s25 = smov 120   ;;  %vm1555_vm7 = vcmask 130048  }
   0x5   :  { %4062 = vmatprep.subr.mxu1 %v4559_v15  ;;  %4083 = vmatprep.mubr.msk.f32.mxu0 %vm4471_vm5, %v4470_v51  ;;  %v32_v63 = vld [vmem:[%s5226_s1] sm:$0xff]  ;;  %s4476_s26 = smov 56   ;;  %s4477_s27 = smov 80   ;;  %vm1558_vm8 = vcmask 195584   ;;  %vm1820_vm13 = vcmask 523264  }
   0x6   :  { %4063 = vmatpush3.msra.mxu1 %v4559_v15  ;;  %v188_v20 = vsub.s32 3, %v4577_v19  ;;  %v4592_v39 = vsub.s32 0, %v4577_v19  ;;  %v4597_v41 = vsub.s32 1, %v4577_v19  ;;  %v182_v57 = vsub.s32 2, %v4577_v19  ;;  %s4478_s28 = smov 112   ;;  %s4479_s29 = smov 48  }
   0x7   :  { %49 = vadd.xlane.f32.xlu0 %v48_v3  ;;  %4064 = vmatprep.subr.mxu1 %v4566_v16  ;;  %v3851_v2 = vadd.f32 -1.0, %v32_v63  ;;  %v33_v3 = vld [vmem:[%s5226_s1 + $0x8] sm:$0xff]  ;;  %s4473_s1 = smov 64   ;;  %s4480_s30 = smov 72  }
   0x8   :  { %4065 = vmatpush3.msra.mxu1 %v4566_v16  ;;  %v189_v22 = vrot.slane %v4585_v21, %v188_v20  ;;  %v84_v40 = vrot.slane %v4585_v21, %v4592_v39  ;;  %v96_v43 = vrot.slane %v4585_v21, %v4597_v41  ;;  %v183_v58 = vrot.slane %v4585_v21, %v182_v57  ;;  %s4481_s0 = smov 104   ;;  %s4482_s9 = smov 40  }
   0x9   :  { %4066 = vmatprep.subr.mxu1 %v4575_v18  ;;  %s4483_s10 = smov 16   ;;  %s4484_s11 = smov 8  }
   0xa   :  { %4067 = vmatpush3.msra.mxu1 %v4575_v18  ;;  %s4485_s12 = smov 24  }
   0xb   :  { %4071 = vmatprep.subr.mxu1 %v4470_v51 }
  0x1d   :  { %191 = vrot.lane.b32.xlu0 %v189_v22, %s4469_s18  ;;  %v198_v22 = vsub.s32 4, %v4577_v19 }
  0x8c   :  { %v47_v4 = vpop.xlane.xlu0 %46 }
  0x8d   :  { %v52_v5 = vmul.f32 0.03125, %v47_v4  ;;  %v4643_v4 = vmul.f32 1e+09, %v3851_v2 }
  0x8f   :  { %v54_v6 = vsub.f32 %v4536_v0, %v52_v5  ;;  %v3852_v5 = vadd.f32 -1.0, %v33_v3 }
  0x90   :  { %v50_v7 = vpop.xlane.xlu0 %49 }
  0x91   :  { %v53_v8 = vmul.f32 0.03125, %v50_v7  ;;  %v56_v9 = vmul.f32 %v54_v6, %v54_v6  ;;  %v85_v42 = vmul.f32 %v84_v40, %v54_v6 }
  0x93   :  { %v55_v10 = vsub.f32 %v4541_v1, %v53_v8  ;;  %v58_v11 = vsel %vm44_vm0, %v56_v9, 0.0  ;;  %v4646_v8 = vmul.f32 1e+09, %v3852_v5 }
  0x94   :  { %59 = vadd.xlane.f32.xlu1 %v58_v11  ;;  %v192_v53 = vpop.permute.xlu0 %191 }
  0x95   :  { %v57_v12 = vmul.f32 %v55_v10, %v55_v10  ;;  %v86_v46 = vmul.f32 %v84_v40, %v55_v10 }
  0x97   :  { %v61_v13 = vsel %vm44_vm0, %v57_v12, 0.0 }
  0x98   :  { %62 = vadd.xlane.f32.xlu1 %v61_v13 }
 0x11d   :  { %v60_v23 = vpop.xlane.xlu1 %59 }
 0x11e   :  { %v65_v24 = vmul.f32 0.032258064, %v60_v23  ;;  %v199_v23 = vrot.slane %v4585_v21, %v198_v22 }
 0x120   :  { %4343 = vrsqrt.f32 %v65_v24  ;;  %vm69_vm1 = vcmp.eq.f32.partialorder %v65_v24, inf  ;;  %v72_v29 = vand.u32 2147483648, %v65_v24  ;;  %vm71_vm2 = vcmp.eq.f32.partialorder %v65_v24, 0.0 }
 0x121   :  { %v63_v25 = vpop.xlane.xlu1 %62 }
 0x122   :  { %v66_v26 = vmul.f32 0.032258064, %v63_v25 }
 0x124   :  { %4345 = vrsqrt.f32 %v66_v26  ;;  %vm76_vm3 = vcmp.eq.f32.partialorder %v66_v26, inf  ;;  %v79_v35 = vand.u32 2147483648, %v66_v26  ;;  %vm78_vm4 = vcmp.eq.f32.partialorder %v66_v26, 0.0 }
 0x12d   :  { %v4344_v27 = vpop.eup %4343 }
 0x12e   :  { %v68_v28 = vmul.f32 %v4344_v27, %v65_v24 }
 0x130   :  { %v70_v30 = vsel %vm69_vm1, %v65_v24, %v68_v28 }
 0x131   :  { %v4346_v31 = vpop.eup %4345  ;;  %v73_v32 = vsel %vm71_vm2, %v72_v29, %v70_v30 }
 0x132   :  { %v75_v33 = vmul.f32 %v4346_v31, %v66_v26  ;;  %v87_v34 = vadd.f32 1e-06, %v73_v32 }
 0x134   :  { %v77_v36 = vsel %vm76_vm3, %v66_v26, %v75_v33  ;;  %4347 = vrcp.f32 %v87_v34 }
 0x135   :  { %v80_v37 = vsel %vm78_vm4, %v79_v35, %v77_v36 }
 0x136   :  { %v88_v38 = vadd.f32 1e-06, %v80_v37 }
 0x138   :  { %4349 = vrcp.f32 %v88_v38 }
 0x141   :  { %v4348_v44 = vpop.eup %4347 }
 0x142   :  { %v90_v45 = vmul.f32 %v4348_v44, %v85_v42 }
 0x144   :  { %v97_v47 = vadd.f32 %v96_v43, %v90_v45 }
 0x145   :  { %v4350_v48 = vpop.eup %4349 }
 0x146   :  { %v92_v49 = vmul.f32 %v4350_v48, %v86_v46  ;;  %4068 = vmatprep.mubr.msk.f32.mxu1 %vm44_vm0, %v97_v47 }
 0x148   :  { %v98_v50 = vadd.f32 %v96_v43, %v92_v49 }
 0x14a   :  { %4069 = vmatmul.mubr.msk.f32.vlgmr.msra.gmra.mxu1 %vm44_vm0, %v98_v50 }
 0x14b   :  { %4073 = vmatprep.mubr.msk.f32.mxu1 %vm4471_vm5, %v4470_v51 }
 0x20a   :  { %v4070_v52 = vpop.f32.mrf.mxu1 }
 0x20b   :  { %v4613_v56 = vadd.f32 %v4070_v52, %v192_v53  ;;  %v4630_v62 = vadd.f32 %v4070_v52, %v183_v58 }
 0x20c   :  { %v171_v54 = vpop.f32.mrf.mxu1 }
 0x20d   :  { %v4609_v55 = vadd.f32 %v192_v53, %v171_v54  ;;  %v4622_v60 = vadd.f32 %v183_v58, %v171_v54 }
 0x20f   :  { %207 = vrot.lane.b32.xlu1 %v4609_v55, %s4472_s19 }
 0x213   :  { %286 = vrot.lane.b32.xlu1 %v4613_v56, %s4472_s19 }
 0x281   :  { %v208_v59 = vpop.permute.xlu1 %207 }
 0x282   :  { %4072 = vmatpush3.xpose.msk.msra.mxu1 %vm209_vm6, %v208_v59 }
 0x283   :  { %4076 = vmatprep.subr.mxu1 %v4470_v51 }
 0x285   :  { %4074 = vmatmul.mubr.msk.f32.vlgmr.msra.gmra.mxu1 %vm209_vm6, %v4622_v60  ;;  %v287_v61 = vpop.permute.xlu1 %286 }
 0x286   :  { %4077 = vmatpush3.xpose.msk.msra.mxu1 %vm209_vm6, %v287_v61  ;;  %4078 = vmatprep.mubr.msk.f32.mxu1 %vm4471_vm5, %v4470_v51 }
 0x287   :  { %4086 = vmatprep.subr.mxu1 %v4470_v51 }
 0x289   :  { %4079 = vmatmul.mubr.msk.f32.vlgmr.msra.gmra.mxu1 %vm209_vm6, %v4630_v62 }
 0x28a   :  { %4088 = vmatprep.mubr.msk.f32.mxu1 %vm4471_vm5, %v4470_v51 }
 0x345   :  { %v281_v6 = vpop.f32.mrf.mxu1 }
 0x346   :  { %v282_v7 = vadd.f32 %v281_v6, %v4643_v4 }
 0x347   :  { %v4075_v9 = vpop.f32.mrf.mxu1 }
 0x348   :  { %v363_v10 = vsel %vm209_vm6, %v282_v7, -inf }
 0x349   :  { %364 = vmax.xlane.f32.xlu1 %v363_v10  ;;  %v359_v11 = vpop.f32.mrf.mxu1 }
 0x34a   :  { %v360_v12 = vadd.f32 %v359_v11, %v4646_v8 }
 0x34b   :  { %v4080_v13 = vpop.f32.mrf.mxu1 }
 0x34c   :  { %v366_v17 = vsel %vm209_vm6, %v360_v12, -inf }
 0x34d   :  { %367 = vmax.xlane.f32.xlu0 %v366_v17 }
 0x363   :  { %201 = vrot.lane.b32.xlu0 %v199_v23, %s4473_s1 }
 0x3d2   :  { %v365_v28 = vpop.xlane.xlu1 %364 }
 0x3d3   :  { %v369_v29 = vsub.f32 %v282_v7, %v365_v28 }
 0x3d5   :  { %v371_v30 = vmul.f32 1.442695, %v369_v29 }
 0x3d6   :  { %v368_v24 = vpop.xlane.xlu0 %367 }
 0x3d7   :  { %v370_v31 = vsub.f32 %v360_v12, %v368_v24  ;;  %4351 = vpow2.f32 %v371_v30 }
 0x3d9   :  { %v373_v32 = vmul.f32 1.442695, %v370_v31 }
 0x3da   :  { %v202_v25 = vpop.permute.xlu0 %201 }
 0x3db   :  { %v4656_v26 = vadd.f32 %v202_v25, %v171_v54  ;;  %v4658_v27 = vadd.f32 %v4070_v52, %v202_v25  ;;  %4353 = vpow2.f32 %v373_v32 }
 0x3dd   :  { %463 = vrot.lane.b32.xlu0 %v4658_v27, %s4473_s1  ;;  %386 = vrot.lane.b32.xlu1 %v4656_v26, %s4473_s1 }
 0x3e1   :  { %541 = vrot.lane.b32.xlu0 %v4609_v55, %s4474_s24  ;;  %619 = vrot.lane.b32.xlu1 %v4613_v56, %s4474_s24 }
 0x3e4   :  { %v4352_v33 = vpop.eup %4351 }
 0x3e5   :  { %539 = vrot.lane.b32.xlu0 %v4622_v60, %s4475_s25  ;;  %v375_v34 = vsel %vm209_vm6, %v4352_v33, 0.0 }
 0x3e8   :  { %v4354_v35 = vpop.eup %4353 }
 0x3e9   :  { %v378_v36 = vsel %vm209_vm6, %v4354_v35, 0.0 }
 0x405   :  { %376 = vadd.xlane.f32.xlu1 %v375_v34 }
 0x409   :  { %379 = vadd.xlane.f32.xlu1 %v378_v36 }
 0x41a   :  { %617 = vrot.lane.b32.xlu1 %v4630_v62, %s4475_s25 }
 0x44f   :  { %v464_v37 = vpop.permute.xlu0 %463  ;;  %v387_v38 = vpop.permute.xlu1 %386 }
 0x450   :  { %4082 = vmatpush3.msra.mxu0 %v387_v38  ;;  %4087 = vmatpush3.msra.mxu1 %v464_v37 }
 0x451   :  { %4091 = vmatprep.subr.mxu0 %v4470_v51  ;;  %4096 = vmatprep.subr.mxu1 %v4470_v51 }
 0x453   :  { %v620_v40 = vpop.permute.xlu1 %619  ;;  %v542_v45 = vpop.permute.xlu0 %541 }
 0x457   :  { %v540_v49 = vpop.permute.xlu0 %539 }
 0x48e   :  { %v377_v42 = vpop.xlane.xlu1 %376 }
 0x48f   :  { %4355 = vrcp.f32 %v377_v42 }
 0x492   :  { %v380_v43 = vpop.xlane.xlu1 %379 }
 0x493   :  { %4357 = vrcp.f32 %v380_v43 }
 0x496   :  { %v618_v50 = vpop.permute.xlu1 %617 }
 0x49c   :  { %v4356_v44 = vpop.eup %4355 }
 0x49d   :  { %v383_v46 = vmul.f32 %v4356_v44, %v4352_v33 }
 0x49f   :  { %4084 = vmatmul.mubr.msk.f32.vlgmr.msra.gmra.mxu0 %vm209_vm6, %v383_v46 }
 0x4a0   :  { %v4358_v47 = vpop.eup %4357  ;;  %4092 = vmatpush3.xpose.msk.msra.mxu0 %vm209_vm6, %v542_v45  ;;  %4093 = vmatprep.mubr.msk.f32.mxu0 %vm4471_vm5, %v4470_v51 }
 0x4a1   :  { %v384_v48 = vmul.f32 %v4358_v47, %v4354_v35  ;;  %4101 = vmatprep.subr.mxu0 %v4470_v51 }
 0x4a3   :  { %4089 = vmatmul.mubr.msk.f32.vlgmr.msra.gmra.mxu1 %vm209_vm6, %v384_v48  ;;  %4094 = vmatmul.mubr.msk.f32.vlgmr.msra.gmra.mxu0 %vm209_vm6, %v540_v49 }
 0x4a4   :  { %4097 = vmatpush3.xpose.msk.msra.mxu1 %vm209_vm6, %v620_v40  ;;  %4098 = vmatprep.mubr.msk.f32.mxu1 %vm4471_vm5, %v4470_v51 }
 0x4a5   :  { %4106 = vmatprep.subr.mxu1 %v4470_v51  ;;  %4103 = vmatprep.mubr.msk.f32.mxu0 %vm4471_vm5, %v4470_v51 }
 0x4a7   :  { %4099 = vmatmul.mubr.msk.f32.vlgmr.msra.gmra.mxu1 %vm209_vm6, %v618_v50 }
 0x4a8   :  { %4108 = vmatprep.mubr.msk.f32.mxu1 %vm4471_vm5, %v4470_v51 }
 0x55f   :  { %v4692_v52 = vpop.f32.mrf.mxu0 }
 0x561   :  { %v4085_v53 = vpop.f32.mrf.mxu0 }
 0x563   :  { %v4694_v54 = vpop.f32.mrf.mxu1  ;;  %v613_v58 = vpop.f32.mrf.mxu0 }
 0x564   :  { %v614_v59 = vadd.f32 %v613_v58, %v4643_v4 }
 0x565   :  { %v4090_v61 = vpop.f32.mrf.mxu1  ;;  %v4095_v63 = vpop.f32.mrf.mxu0 }
 0x566   :  { %v695_v2 = vsel %vm209_vm6, %v614_v59, -inf }
 0x567   :  { %696 = vmax.xlane.f32.xlu0 %v695_v2  ;;  %v691_v3 = vpop.f32.mrf.mxu1 }
 0x568   :  { %v692_v5 = vadd.f32 %v691_v3, %v4646_v8 }
 0x569   :  { %v4100_v6 = vpop.f32.mrf.mxu1 }
 0x56a   :  { %v698_v7 = vsel %vm209_vm6, %v692_v5, -inf }
 0x56b   :  { %699 = vmax.xlane.f32.xlu1 %v698_v7 }
 0x57c   :  { %793 = vrot.lane.b32.xlu1 %v4658_v27, %s4476_s26 }
 0x57d   :  { %717 = vrot.lane.b32.xlu0 %v4656_v26, %s4476_s26 }
 0x580   :  { %871 = vrot.lane.b32.xlu1 %v4609_v55, %s4477_s27 }
 0x584   :  { %949 = vrot.lane.b32.xlu1 %v4613_v56, %s4477_s27 }
 0x588   :  { %947 = vrot.lane.b32.xlu1 %v4630_v62, %s4478_s28 }
 0x5f0   :  { %v697_v9 = vpop.xlane.xlu0 %696 }
 0x5f1   :  { %v701_v10 = vsub.f32 %v614_v59, %v697_v9 }
 0x5f3   :  { %v703_v11 = vmul.f32 1.442695, %v701_v10 }
 0x5f4   :  { %v718_v12 = vpop.permute.xlu0 %717  ;;  %v700_v13 = vpop.xlane.xlu1 %699 }
 0x5f5   :  { %4359 = vpow2.f32 %v703_v11  ;;  %v702_v17 = vsub.f32 %v692_v5, %v700_v13  ;;  %4102 = vmatpush3.msra.mxu0 %v718_v12 }
 0x5f6   :  { %4111 = vmatprep.subr.mxu0 %v4470_v51 }
 0x5f7   :  { %v705_v23 = vmul.f32 1.442695, %v702_v17 }
 0x5f8   :  { %v794_v24 = vpop.permute.xlu1 %793 }
 0x5f9   :  { %4361 = vpow2.f32 %v705_v23  ;;  %4107 = vmatpush3.msra.mxu1 %v794_v24 }
 0x5fa   :  { %4116 = vmatprep.subr.mxu1 %v4470_v51 }
 0x5fc   :  { %v872_v33 = vpop.permute.xlu1 %871 }
 0x600   :  { %v950_v37 = vpop.permute.xlu1 %949 }
 0x602   :  { %v4360_v25 = vpop.eup %4359 }
 0x603   :  { %v707_v28 = vsel %vm209_vm6, %v4360_v25, 0.0 }
 0x604   :  { %708 = vadd.xlane.f32.xlu0 %v707_v28  ;;  %v948_v42 = vpop.permute.xlu1 %947 }
 0x606   :  { %v4362_v29 = vpop.eup %4361 }
 0x607   :  { %v710_v30 = vsel %vm209_vm6, %v4362_v29, 0.0 }
 0x608   :  { %711 = vadd.xlane.f32.xlu0 %v710_v30 }
 0x61e   :  { %869 = vrot.lane.b32.xlu0 %v4622_v60, %s4478_s28 }
 0x68d   :  { %v709_v31 = vpop.xlane.xlu0 %708 }
 0x68e   :  { %4363 = vrcp.f32 %v709_v31 }
 0x691   :  { %v712_v32 = vpop.xlane.xlu0 %711 }
 0x692   :  { %4365 = vrcp.f32 %v712_v32 }
 0x695   :  { %v870_v40 = vpop.permute.xlu0 %869 }
 0x69b   :  { %v4364_v34 = vpop.eup %4363 }
 0x69c   :  { %v715_v35 = vmul.f32 %v4364_v34, %v4360_v25 }
 0x69e   :  { %4104 = vmatmul.mubr.msk.f32.vlgmr.msra.gmra.mxu0 %vm209_vm6, %v715_v35 }
 0x69f   :  { %v4366_v36 = vpop.eup %4365  ;;  %4112 = vmatpush3.xpose.msk.msra.mxu0 %vm209_vm6, %v872_v33  ;;  %4113 = vmatprep.mubr.msk.f32.mxu0 %vm4471_vm5, %v4470_v51 }
 0x6a0   :  { %v716_v38 = vmul.f32 %v4366_v36, %v4362_v29  ;;  %4121 = vmatprep.subr.mxu0 %v4470_v51 }
 0x6a2   :  { %4109 = vmatmul.mubr.msk.f32.vlgmr.msra.gmra.mxu1 %vm209_vm6, %v716_v38  ;;  %4114 = vmatmul.mubr.msk.f32.vlgmr.msra.gmra.mxu0 %vm209_vm6, %v870_v40 }
 0x6a3   :  { %4117 = vmatpush3.xpose.msk.msra.mxu1 %vm209_vm6, %v950_v37  ;;  %4118 = vmatprep.mubr.msk.f32.mxu1 %vm4471_vm5, %v4470_v51 }
 0x6a4   :  { %4126 = vmatprep.subr.mxu1 %v4470_v51  ;;  %4123 = vmatprep.mubr.msk.f32.mxu0 %vm4471_vm5, %v4470_v51 }
 0x6a6   :  { %4119 = vmatmul.mubr.msk.f32.vlgmr.msra.gmra.mxu1 %vm209_vm6, %v948_v42 }
 0x6a7   :  { %4128 = vmatprep.mubr.msk.f32.mxu1 %vm4471_vm5, %v4470_v51 }
 0x75e   :  { %v4732_v43 = vpop.f32.mrf.mxu0 }
 0x760   :  { %v4105_v44 = vpop.f32.mrf.mxu0 }
 0x762   :  { %v4734_v45 = vpop.f32.mrf.mxu1  ;;  %v943_v46 = vpop.f32.mrf.mxu0 }
 0x763   :  { %v944_v47 = vadd.f32 %v943_v46, %v4643_v4 }
 0x764   :  { %v4110_v48 = vpop.f32.mrf.mxu1  ;;  %v4115_v49 = vpop.f32.mrf.mxu0 }
 0x765   :  { %v1025_v50 = vsel %vm209_vm6, %v944_v47, -inf }
 0x766   :  { %1026 = vmax.xlane.f32.xlu0 %v1025_v50  ;;  %v1021_v53 = vpop.f32.mrf.mxu1 }
 0x767   :  { %v1022_v58 = vadd.f32 %v1021_v53, %v4646_v8 }
 0x768   :  { %v4120_v59 = vpop.f32.mrf.mxu1 }
 0x769   :  { %v1028_v61 = vsel %vm209_vm6, %v1022_v58, -inf }
 0x76a   :  { %1029 = vmax.xlane.f32.xlu1 %v1028_v61 }
 0x77b   :  { %1123 = vrot.lane.b32.xlu1 %v4658_v27, %s4479_s29 }
 0x77c   :  { %1047 = vrot.lane.b32.xlu0 %v4656_v26, %s4479_s29 }
 0x77f   :  { %1201 = vrot.lane.b32.xlu1 %v4609_v55, %s4480_s30 }
 0x783   :  { %1279 = vrot.lane.b32.xlu1 %v4613_v56, %s4480_s30 }
 0x787   :  { %1277 = vrot.lane.b32.xlu1 %v4630_v62, %s4481_s0 }
 0x7ef   :  { %v1027_v63 = vpop.xlane.xlu0 %1026 }
 0x7f0   :  { %v1031_v2 = vsub.f32 %v944_v47, %v1027_v63 }
 0x7f2   :  { %v1033_v3 = vmul.f32 1.442695, %v1031_v2 }
 0x7f3   :  { %v1048_v5 = vpop.permute.xlu0 %1047  ;;  %v1030_v6 = vpop.xlane.xlu1 %1029 }
 0x7f4   :  { %4367 = vpow2.f32 %v1033_v3  ;;  %v1032_v7 = vsub.f32 %v1022_v58, %v1030_v6  ;;  %4122 = vmatpush3.msra.mxu0 %v1048_v5 }
 0x7f5   :  { %4131 = vmatprep.subr.mxu0 %v4470_v51 }
 0x7f6   :  { %v1035_v9 = vmul.f32 1.442695, %v1032_v7 }
 0x7f7   :  { %v1124_v10 = vpop.permute.xlu1 %1123 }
 0x7f8   :  { %4369 = vpow2.f32 %v1035_v9  ;;  %4127 = vmatpush3.msra.mxu1 %v1124_v10 }
 0x7f9   :  { %4136 = vmatprep.subr.mxu1 %v4470_v51 }
 0x7fb   :  { %v1202_v17 = vpop.permute.xlu1 %1201 }
 0x7ff   :  { %v1280_v28 = vpop.permute.xlu1 %1279 }
 0x801   :  { %v4368_v55 = vpop.eup %4367 }
 0x802   :  { %v1037_v56 = vsel %vm209_vm6, %v4368_v55, 0.0 }
 0x803   :  { %1038 = vadd.xlane.f32.xlu0 %v1037_v56  ;;  %v1278_v30 = vpop.permute.xlu1 %1277 }
 0x805   :  { %v4370_v62 = vpop.eup %4369 }
 0x806   :  { %v1040_v11 = vsel %vm209_vm6, %v4370_v62, 0.0 }
 0x807   :  { %1041 = vadd.xlane.f32.xlu0 %v1040_v11 }
 0x81d   :  { %1199 = vrot.lane.b32.xlu0 %v4622_v60, %s4481_s0 }
 0x88c   :  { %v1039_v12 = vpop.xlane.xlu0 %1038 }
 0x88d   :  { %4371 = vrcp.f32 %v1039_v12 }
 0x890   :  { %v1042_v13 = vpop.xlane.xlu0 %1041 }
 0x891   :  { %4373 = vrcp.f32 %v1042_v13 }
 0x894   :  { %v1200_v60 = vpop.permute.xlu0 %1199 }
 0x89a   :  { %v4372_v23 = vpop.eup %4371 }
 0x89b   :  { %v1045_v24 = vmul.f32 %v4372_v23, %v4368_v55 }
 0x89d   :  { %4124 = vmatmul.mubr.msk.f32.vlgmr.msra.gmra.mxu0 %vm209_vm6, %v1045_v24 }
 0x89e   :  { %v4374_v25 = vpop.eup %4373  ;;  %4132 = vmatpush3.xpose.msk.msra.mxu0 %vm209_vm6, %v1202_v17  ;;  %4133 = vmatprep.mubr.msk.f32.mxu0 %vm4471_vm5, %v4470_v51 }
 0x89f   :  { %v1046_v29 = vmul.f32 %v4374_v25, %v4370_v62  ;;  %4141 = vmatprep.subr.mxu0 %v4470_v51 }
 0x8a1   :  { %4129 = vmatmul.mubr.msk.f32.vlgmr.msra.gmra.mxu1 %vm209_vm6, %v1046_v29  ;;  %4134 = vmatmul.mubr.msk.f32.vlgmr.msra.gmra.mxu0 %vm209_vm6, %v1200_v60 }
 0x8a2   :  { %4137 = vmatpush3.xpose.msk.msra.mxu1 %vm209_vm6, %v1280_v28  ;;  %4138 = vmatprep.mubr.msk.f32.mxu1 %vm4471_vm5, %v4470_v51 }
 0x8a3   :  { %4146 = vmatprep.subr.mxu1 %v4470_v51  ;;  %4143 = vmatprep.mubr.msk.f32.mxu0 %vm4471_vm5, %v4470_v51 }
 0x8a5   :  { %4139 = vmatmul.mubr.msk.f32.vlgmr.msra.gmra.mxu1 %vm209_vm6, %v1278_v30 }
 0x8a6   :  { %4148 = vmatprep.mubr.msk.f32.mxu1 %vm4471_vm5, %v4470_v51 }
 0x95d   :  { %v1119_v31 = vpop.f32.mrf.mxu0 }
 0x95f   :  { %v4125_v32 = vpop.f32.mrf.mxu0 }
 0x961   :  { %v1195_v33 = vpop.f32.mrf.mxu1  ;;  %v1273_v34 = vpop.f32.mrf.mxu0 }
 0x962   :  { %v1274_v35 = vadd.f32 %v1273_v34, %v4643_v4 }
 0x963   :  { %v4130_v36 = vpop.f32.mrf.mxu1  ;;  %v4135_v37 = vpop.f32.mrf.mxu0 }
 0x964   :  { %v1355_v38 = vsel %vm209_vm6, %v1274_v35, -inf }
 0x965   :  { %1356 = vmax.xlane.f32.xlu0 %v1355_v38  ;;  %v1351_v40 = vpop.f32.mrf.mxu1 }
 0x966   :  { %v1352_v42 = vadd.f32 %v1351_v40, %v4646_v8 }
 0x967   :  { %v4140_v44 = vpop.f32.mrf.mxu1 }
 0x968   :  { %v1358_v46 = vsel %vm209_vm6, %v1352_v42, -inf }
 0x969   :  { %1359 = vmax.xlane.f32.xlu1 %v1358_v46 }
 0x97a   :  { %1453 = vrot.lane.b32.xlu1 %v4658_v27, %s4482_s9 }
 0x97e   :  { %1571 = vrot.lane.b32.xlu1 %v4554_v14, %s4469_s18 }
 0x982   :  { %1569 = vrot.lane.b32.xlu1 %v4559_v15, %s4469_s18 }
 0x986   :  { %1567 = vrot.lane.b32.xlu1 %v4566_v16, %s4469_s18 }
 0x98a   :  { %1539 = vrot.lane.b32.xlu1 %v1119_v31, %s4483_s10 }
 0x9ee   :  { %v1357_v47 = vpop.xlane.xlu0 %1356 }
 0x9ef   :  { %v1361_v48 = vsub.f32 %v1274_v35, %v1357_v47 }
 0x9f1   :  { %v1363_v49 = vmul.f32 1.442695, %v1361_v48 }
 0x9f2   :  { %v1360_v50 = vpop.xlane.xlu1 %1359 }
 0x9f3   :  { %4375 = vpow2.f32 %v1363_v49  ;;  %v1362_v53 = vsub.f32 %v1352_v42, %v1360_v50 }
 0x9f5   :  { %v1365_v58 = vmul.f32 1.442695, %v1362_v53  ;;  %v1721_v53 = vld [vmem:[%s5228_s3 + $0x18] sm:$0xff] }
 0x9f6   :  { %v1454_v27 = vpop.permute.xlu1 %1453 }
 0x9f7   :  { %4377 = vpow2.f32 %v1365_v58  ;;  %4147 = vmatpush3.msra.mxu1 %v1454_v27  ;;  %v1720_v58 = vld [vmem:[%s5228_s3 + $0x10] sm:$0xff]  ;;  %v1719_v27 = vld [vmem:[%s5228_s3 + $0x8] sm:$0xff] }
 0x9f8   :  { %4162 = vmatprep.subr.mxu1 %v1721_v53 }
 0x9fa   :  { %v1572_v2 = vpop.permute.xlu1 %1571 }
 0x9fe   :  { %v1570_v5 = vpop.permute.xlu1 %1569 }
 0xa00   :  { %v4376_v14 = vpop.eup %4375 }
 0xa01   :  { %v1367_v59 = vsel %vm209_vm6, %v4376_v14, 0.0 }
 0xa02   :  { %1368 = vadd.xlane.f32.xlu0 %v1367_v59  ;;  %v1568_v7 = vpop.permute.xlu1 %1567  ;;  %v1819_v59 = vld [vmem:[%s5229_s4 + $0x38] sm:$0xff] }
 0xa04   :  { %v4378_v15 = vpop.eup %4377 }
 0xa05   :  { %v1370_v16 = vsel %vm209_vm6, %v4378_v15, 0.0 }
 0xa06   :  { %1371 = vadd.xlane.f32.xlu0 %v1370_v16  ;;  %v1540_v13 = vpop.permute.xlu1 %1539  ;;  %v1817_v16 = vld [vmem:[%s5229_s4 + $0x28] sm:$0xff] }
 0xa1c   :  { %1377 = vrot.lane.b32.xlu0 %v4656_v26, %s4482_s9 }
 0xa20   :  { %1531 = vrot.lane.b32.xlu0 %v4732_v43, %s4484_s11 }
 0xa24   :  { %1533 = vrot.lane.b32.xlu0 %v4734_v45, %s4484_s11 }
 0xa28   :  { %1541 = vrot.lane.b32.xlu0 %v1195_v33, %s4483_s10 }
 0xa2c   :  { %1565 = vrot.lane.b32.xlu0 %v4575_v18, %s4469_s18 }
 0xa8b   :  { %v1369_v61 = vpop.xlane.xlu0 %1368 }
 0xa8c   :  { %4379 = vrcp.f32 %v1369_v61  ;;  %v1816_v61 = vld [vmem:[%s5229_s4 + $0x20] sm:$0xff] }
 0xa8f   :  { %v1372_v63 = vpop.xlane.xlu0 %1371 }
 0xa90   :  { %4381 = vrcp.f32 %v1372_v63 }
 0xa93   :  { %v1378_v3 = vpop.permute.xlu0 %1377 }
 0xa94   :  { %4142 = vmatpush3.msra.mxu0 %v1378_v3 }
 0xa95   :  { %4151 = vmatprep.subr.mxu0 %v1572_v2 }
 0xa97   :  { %v1532_v18 = vpop.permute.xlu0 %1531 }
 0xa98   :  { %v1553_v17 = vsel %vm209_vm6, %v4692_v52, %v1532_v18  ;;  %v1662_v52 = vsub.s32 5, %v4577_v19 }
 0xa99   :  { %v4380_v26 = vpop.eup %4379  ;;  %v1556_v23 = vsel %vm1555_vm7, %v1553_v17, %v1540_v13  ;;  %v1714_v13 = vsub.s32 7, %v4577_v19 }
 0xa9a   :  { %v1375_v6 = vmul.f32 %v4380_v26, %v4376_v14  ;;  %v1663_v31 = vrot.slane %v4585_v21, %v1662_v52  ;;  %v1718_v14 = vld [vmem:[%s5228_s3] sm:$0xff] }
 0xa9b   :  { %v1534_v9 = vpop.permute.xlu0 %1533 }
 0xa9c   :  { %4144 = vmatmul.mubr.msk.f32.vlgmr.msra.gmra.mxu0 %vm209_vm6, %v1375_v6  ;;  %v1554_v28 = vsel %vm209_vm6, %v4694_v54, %v1534_v9 }
 0xa9d   :  { %v4382_v43 = vpop.eup %4381  ;;  %4152 = vmatpush3.msra.mxu0 %v1572_v2 }
 0xa9e   :  { %v1376_v45 = vmul.f32 %v4382_v43, %v4378_v15  ;;  %4153 = vmatprep.subr.mxu0 %v1570_v5  ;;  %v1818_v15 = vld [vmem:[%s5229_s4 + $0x30] sm:$0xff] }
 0xa9f   :  { %4154 = vmatpush3.msra.mxu0 %v1570_v5  ;;  %v1542_v10 = vpop.permute.xlu0 %1541 }
 0xaa0   :  { %4149 = vmatmul.mubr.msk.f32.vlgmr.msra.gmra.mxu1 %vm209_vm6, %v1376_v45  ;;  %4155 = vmatprep.subr.mxu0 %v1568_v7  ;;  %v1557_v29 = vsel %vm1555_vm7, %v1554_v28, %v1542_v10 }
 0xaa1   :  { %4156 = vmatpush3.msra.mxu0 %v1568_v7  ;;  %4163 = vmatpush3.msra.mxu1 %v1721_v53 }
 0xaa2   :  { %4164 = vmatprep.subr.mxu1 %v1720_v58 }
 0xaa3   :  { %v1566_v55 = vpop.permute.xlu0 %1565  ;;  %4165 = vmatpush3.msra.mxu1 %v1720_v58 }
 0xaa4   :  { %4157 = vmatprep.subr.mxu0 %v1566_v55  ;;  %4166 = vmatprep.subr.mxu1 %v1719_v27 }
 0xaa5   :  { %4158 = vmatpush3.msra.mxu0 %v1566_v55  ;;  %4167 = vmatpush3.msra.mxu1 %v1719_v27 }
 0xaa6   :  { %4168 = vmatprep.subr.mxu1 %v1718_v14  ;;  %4173 = vmatprep.subr.mxu0 %v1819_v59 }
 0xaa7   :  { %4169 = vmatpush3.msra.mxu1 %v1718_v14 }
 0xb5c   :  { %v1449_v56 = vpop.f32.mrf.mxu0 }
 0xb5d   :  { %1547 = vrot.lane.b32.xlu1 %v1449_v56, %s4485_s12 }
 0xb5e   :  { %v4145_v62 = vpop.f32.mrf.mxu0 }
 0xb60   :  { %v1525_v11 = vpop.f32.mrf.mxu1 }
 0xb61   :  { %1549 = vrot.lane.b32.xlu1 %v1525_v11, %s4485_s12 }
 0xb62   :  { %v4150_v12 = vpop.f32.mrf.mxu1 }
 0xb63   :  { %v1702_v12 = vsub.s32 6, %v4577_v19  ;;  %v3931_v19 = vld [vmem:[%s5229_s4 + $0x50] sm:$0xff] }
 0xb65   :  { %v1703_v17 = vrot.slane %v4585_v21, %v1702_v12 }
 0xbcf   :  { %v1548_v24 = vpop.permute.xlu1 %1547 }
 0xbd0   :  { %v1559_v25 = vsel %vm1558_vm8, %v1556_v23, %v1548_v24  ;;  %v1715_v24 = vrot.slane %v4585_v21, %v1714_v13  ;;  %v1814_v21 = vld [vmem:[%s5229_s4 + $0x10] sm:$0xff] }
 0xbd1   :  { %4159 = vmatprep.mubr.msk.f32.mxu0 %vm44_vm0, %v1559_v25 }
 0xbd3   :  { %v1550_v60 = vpop.permute.xlu1 %1549 }
 0xbd4   :  { %v1560_v30 = vsel %vm1558_vm8, %v1557_v29, %v1550_v60 }
 0xbd5   :  { %4160 = vmatmul.mubr.msk.f32.vlgmr.msra.gmra.mxu0 %vm44_vm0, %v1560_v30 }
 0xbd6   :  { %4174 = vmatpush3.msra.mxu0 %v1819_v59 }
 0xbd7   :  { %4175 = vmatprep.subr.mxu0 %v1818_v15 }
 0xbd8   :  { %4176 = vmatpush3.msra.mxu0 %v1818_v15 }
 0xbd9   :  { %4177 = vmatprep.subr.mxu0 %v1817_v16 }
 0xbda   :  { %4178 = vmatpush3.msra.mxu0 %v1817_v16 }
 0xbdb   :  { %4179 = vmatprep.subr.mxu0 %v1816_v61 }
 0xbdc   :  { %4180 = vmatpush3.msra.mxu0 %v1816_v61 }
 0xc95   :  { %v4161_v32 = vpop.f32.mrf.mxu0 }
 0xc96   :  { %v1659_v33 = vadd.f32 %v4161_v32, %v4541_v1 }
 0xc97   :  { %v1649_v34 = vpop.f32.mrf.mxu0 }
 0xc98   :  { %v4815_v35 = vadd.f32 %v1663_v31, %v1659_v33  ;;  %v1658_v54 = vadd.f32 %v1649_v34, %v4536_v0  ;;  %v1815_v33 = vld [vmem:[%s5229_s4 + $0x18] sm:$0xff]  ;;  %v1813_v34 = vld [vmem:[%s5229_s4 + $0x8] sm:$0xff] }
 0xc99   :  { %4181 = vmatprep.subr.mxu0 %v1815_v33 }
 0xc9a   :  { %v4818_v36 = vadd.f32 %v1663_v31, %v1658_v54  ;;  %v1669_v37 = vsel %vm44_vm0, %v4815_v35, 0.0  ;;  %4182 = vmatpush3.msra.mxu0 %v1815_v33  ;;  %v1812_v54 = vld [vmem:[%s5229_s4] sm:$0xff] }
 0xc9b   :  { %1670 = vadd.xlane.f32.xlu1 %v1669_v37  ;;  %4183 = vmatprep.subr.mxu0 %v1814_v21  ;;  %v3881_v37 = vld [vmem:[%s5231_s6] ss:$0 sm:$0xff] }
 0xc9c   :  { %v1666_v38 = vsel %vm44_vm0, %v4818_v36, 0.0  ;;  %4184 = vmatpush3.msra.mxu0 %v1814_v21 }
 0xc9d   :  { %1667 = vadd.xlane.f32.xlu0 %v1666_v38  ;;  %4185 = vmatprep.subr.mxu0 %v1813_v34 }
 0xc9e   :  { %4186 = vmatpush3.msra.mxu0 %v1813_v34 }
 0xc9f   :  { %4187 = vmatprep.subr.mxu0 %v1812_v54 }
 0xca0   :  { %4188 = vmatpush3.msra.mxu0 %v1812_v54 }
 0xca1   :  { %4213 = vmatprep.subr.mxu0 %v4470_v51 }
 0xd24   :  { %v1671_v40 = vpop.xlane.xlu1 %1670 }
 0xd25   :  { %v1673_v42 = vmul.f32 0.03125, %v1671_v40 }
 0xd26   :  { %v1668_v44 = vpop.xlane.xlu0 %1667 }
 0xd27   :  { %v1672_v46 = vmul.f32 0.03125, %v1668_v44  ;;  %v4825_v1 = vsub.f32 %v4815_v35, %v1673_v42 }
 0xd29   :  { %v1674_v47 = vsub.f32 %v4818_v36, %v1672_v46  ;;  %v1677_v49 = vmul.f32 %v4825_v1, %v4825_v1  ;;  %v1705_v29 = vmul.f32 %v1703_v17, %v4825_v1 }
 0xd2b   :  { %v1676_v0 = vmul.f32 %v1674_v47, %v1674_v47  ;;  %v1681_v50 = vsel %vm44_vm0, %v1677_v49, 0.0  ;;  %v1704_v23 = vmul.f32 %v1703_v17, %v1674_v47  ;;  %v3886_v47 = vld [vmem:[%s5230_s5 + $0x8] ss:$0 sm:$0xff] }
 0xd2d   :  { %v1678_v48 = vsel %vm44_vm0, %v1676_v0, 0.0 }
 0xd2e   :  { %1679 = vadd.xlane.f32.xlu0 %v1678_v48 }
 0xd32   :  { %1682 = vadd.xlane.f32.xlu0 %v1681_v50 }
 0xdb7   :  { %v1680_v63 = vpop.xlane.xlu0 %1679 }
 0xdb8   :  { %v1684_v2 = vmul.f32 0.032258064, %v1680_v63 }
 0xdba   :  { %4383 = vrsqrt.f32 %v1684_v2  ;;  %vm1688_vm9 = vcmp.eq.f32.partialorder %v1684_v2, inf  ;;  %v1691_v43 = vand.u32 2147483648, %v1684_v2  ;;  %vm1690_vm10 = vcmp.eq.f32.partialorder %v1684_v2, 0.0 }
 0xdbb   :  { %v1683_v3 = vpop.xlane.xlu0 %1682 }
 0xdbc   :  { %v1685_v26 = vmul.f32 0.032258064, %v1683_v3 }
 0xdbe   :  { %4385 = vrsqrt.f32 %v1685_v26  ;;  %vm1695_vm11 = vcmp.eq.f32.partialorder %v1685_v26, inf  ;;  %v1698_v55 = vand.u32 2147483648, %v1685_v26  ;;  %vm1697_vm12 = vcmp.eq.f32.partialorder %v1685_v26, 0.0 }
 0xdc7   :  { %v4384_v5 = vpop.eup %4383 }
 0xdc8   :  { %v1687_v6 = vmul.f32 %v4384_v5, %v1684_v2  ;;  %v4907_v5 = vld [vmem:[%s5227_s2 + $0x38] sm:$0xff] }
 0xdc9   :  { %4192 = vmatprep.subr.mxu1 %v4907_v5 }
 0xdca   :  { %v1689_v45 = vsel %vm1688_vm9, %v1684_v2, %v1687_v6  ;;  %v4912_v6 = vld [vmem:[%s5227_s2 + $0x30] sm:$0xff] }
 0xdcb   :  { %v4386_v7 = vpop.eup %4385  ;;  %v1692_v18 = vsel %vm1690_vm10, %v1691_v43, %v1689_v45  ;;  %v4919_v43 = vld [vmem:[%s5227_s2 + $0x28] sm:$0xff]  ;;  %v4926_v45 = vld [vmem:[%s5227_s2 + $0x20] sm:$0xff] }
 0xdcc   :  { %v1706_v9 = vadd.f32 1e-06, %v1692_v18  ;;  %v1694_v10 = vmul.f32 %v4386_v7, %v1685_v26  ;;  %v4936_v7 = vld [vmem:[%s5230_s5 + $0x10] sm:$0xff] }
 0xdcd   :  { %v2060_v18 = vrot.slane %v4936_v7, %v188_v20 }
 0xdce   :  { %4387 = vrcp.f32 %v1706_v9  ;;  %v1696_v56 = vsel %vm1695_vm11, %v1685_v26, %v1694_v10 }
 0xdcf   :  { %v1699_v62 = vsel %vm1697_vm12, %v1698_v55, %v1696_v56 }
 0xdd0   :  { %v1707_v11 = vadd.f32 1e-06, %v1699_v62 }
 0xdd2   :  { %4389 = vrcp.f32 %v1707_v11 }
 0xddb   :  { %v4388_v25 = vpop.eup %4387 }
 0xddc   :  { %v1709_v28 = vmul.f32 %v4388_v25, %v1704_v23 }
 0xdde   :  { %v1716_v60 = vadd.f32 %v1715_v24, %v1709_v28 }
 0xddf   :  { %v4390_v30 = vpop.eup %4389 }
 0xde0   :  { %v1711_v31 = vmul.f32 %v4390_v30, %v1705_v29  ;;  %4170 = vmatprep.mubr.msk.f32.mxu1 %vm44_vm0, %v1716_v60 }
 0xde2   :  { %v1717_v32 = vadd.f32 %v1715_v24, %v1711_v31 }
 0xde4   :  { %4171 = vmatmul.mubr.msk.f32.vlgmr.msra.gmra.mxu1 %vm44_vm0, %v1717_v32  ;;  %v1955_v32 = vrot.slane %v4936_v7, %v4592_v39 }
 0xde5   :  { %4193 = vmatpush3.msra.mxu1 %v4907_v5 }
 0xde6   :  { %4194 = vmatprep.subr.mxu1 %v4912_v6 }
 0xde7   :  { %4195 = vmatpush3.msra.mxu1 %v4912_v6 }
 0xde8   :  { %4196 = vmatprep.subr.mxu1 %v4919_v43 }
 0xde9   :  { %4197 = vmatpush3.msra.mxu1 %v4919_v43 }
 0xdea   :  { %4198 = vmatprep.subr.mxu1 %v4926_v45 }
 0xdeb   :  { %4199 = vmatpush3.msra.mxu1 %v4926_v45 }
 0xdec   :  { %4203 = vmatprep.subr.mxu1 %v4470_v51 }
 0xea4   :  { %v4172_v38 = vpop.f32.mrf.mxu1 }
 0xea5   :  { %v1807_v40 = vadd.f32 %v4172_v38, %v3881_v37  ;;  %v1967_v38 = vrot.slane %v4936_v7, %v4597_v41 }
 0xea6   :  { %v1801_v42 = vpop.f32.mrf.mxu1 }
 0xea7   :  { %v1802_v44 = vadd.f32 %v3881_v37, %v1801_v42  ;;  %v1811_v1 = vmax.f32 %v1807_v40, 0.0 }
 0xea9   :  { %v1810_v46 = vmax.f32 %v1802_v44, 0.0 }
 0xeab   :  { %4189 = vmatprep.mubr.msk.f32.mxu0 %vm1820_vm13, %v1810_v46 }
 0xeac   :  { %4190 = vmatmul.mubr.msk.f32.vlgmr.msra.gmra.mxu0 %vm1820_vm13, %v1811_v1 }
 0xead   :  { %4215 = vmatprep.mubr.msk.f32.mxu0 %vm4471_vm5, %v4470_v51 }
 0xf6c   :  { %v4191_v0 = vpop.f32.mrf.mxu0 }
 0xf6d   :  { %v1903_v48 = vadd.f32 %v4191_v0, %v4815_v35 }
 0xf6e   :  { %v1893_v49 = vpop.f32.mrf.mxu0 }
 0xf6f   :  { %v4891_v50 = vadd.f32 %v3886_v47, %v1903_v48  ;;  %v1902_v53 = vadd.f32 %v1893_v49, %v4818_v36  ;;  %v2054_v49 = vrot.slane %v4936_v7, %v182_v57 }
 0xf71   :  { %v4894_v58 = vadd.f32 %v3886_v47, %v1902_v53  ;;  %v1921_v27 = vsel %vm44_vm0, %v4891_v50, 0.0 }
 0xf72   :  { %1922 = vadd.xlane.f32.xlu1 %v1921_v27 }
 0xf73   :  { %v1918_v14 = vsel %vm44_vm0, %v4894_v58, 0.0 }
 0xf74   :  { %1919 = vadd.xlane.f32.xlu0 %v1918_v14 }
 0xffb   :  { %v1923_v59 = vpop.xlane.xlu1 %1922 }
 0xffc   :  { %v1925_v15 = vmul.f32 0.03125, %v1923_v59 }
 0xffd   :  { %v1920_v16 = vpop.xlane.xlu0 %1919 }
 0xffe   :  { %v1927_v35 = vsub.f32 %v4891_v50, %v1925_v15  ;;  %v1924_v61 = vmul.f32 0.03125, %v1920_v16 }
0x1000   :  { %v1926_v63 = vsub.f32 %v4894_v58, %v1924_v61  ;;  %v1929_v2 = vmul.f32 %v1927_v35, %v1927_v35  ;;  %v1957_v21 = vmul.f32 %v1955_v32, %v1927_v35 }
0x1002   :  { %v1933_v36 = vsel %vm44_vm0, %v1929_v2, 0.0  ;;  %v1928_v3 = vmul.f32 %v1926_v63, %v1926_v63  ;;  %v1956_v34 = vmul.f32 %v1955_v32, %v1926_v63 }
0x1003   :  { %1934 = vadd.xlane.f32.xlu1 %v1933_v36 }
0x1004   :  { %v1930_v26 = vsel %vm44_vm0, %v1928_v3, 0.0  ;;  %v2070_v3 = vrot.slane %v4936_v7, %v198_v22 }
0x1005   :  { %1931 = vadd.xlane.f32.xlu0 %v1930_v26 }
0x101b   :  { %2062 = vrot.lane.b32.xlu0 %v2060_v18, %s4469_s18 }
0x108c   :  { %v1935_v9 = vpop.xlane.xlu1 %1934 }
0x108d   :  { %v1937_v10 = vmul.f32 0.032258064, %v1935_v9 }
0x108e   :  { %v1932_v55 = vpop.xlane.xlu0 %1931 }
0x108f   :  { %4391 = vrsqrt.f32 %v1937_v10  ;;  %v1936_v56 = vmul.f32 0.032258064, %v1932_v55  ;;  %vm1947_vm14 = vcmp.eq.f32.partialorder %v1937_v10, inf  ;;  %v1950_v17 = vand.u32 2147483648, %v1937_v10 }
0x1090   :  { %vm1949_vm15 = vcmp.eq.f32.partialorder %v1937_v10, 0.0 }
0x1091   :  { %4393 = vrsqrt.f32 %v1936_v56  ;;  %vm1940_vm1 = vcmp.eq.f32.partialorder %v1936_v56, inf  ;;  %v1943_v20 = vand.u32 2147483648, %v1936_v56  ;;  %vm1942_vm2 = vcmp.eq.f32.partialorder %v1936_v56, 0.0 }
0x1092   :  { %v2063_v1 = vpop.permute.xlu0 %2062 }
0x109c   :  { %v4392_v62 = vpop.eup %4391 }
0x109d   :  { %v1946_v11 = vmul.f32 %v4392_v62, %v1937_v10 }
0x109e   :  { %v4394_v23 = vpop.eup %4393 }
0x109f   :  { %v1948_v24 = vsel %vm1947_vm14, %v1937_v10, %v1946_v11  ;;  %v1939_v28 = vmul.f32 %v4394_v23, %v1936_v56 }
0x10a0   :  { %v1951_v25 = vsel %vm1949_vm15, %v1950_v17, %v1948_v24 }
0x10a1   :  { %v1959_v29 = vadd.f32 1e-06, %v1951_v25  ;;  %v1941_v60 = vsel %vm1940_vm1, %v1936_v56, %v1939_v28 }
0x10a2   :  { %v1944_v30 = vsel %vm1942_vm2, %v1943_v20, %v1941_v60 }
0x10a3   :  { %4395 = vrcp.f32 %v1959_v29  ;;  %v1958_v31 = vadd.f32 1e-06, %v1944_v30 }
0x10a5   :  { %4397 = vrcp.f32 %v1958_v31 }
0x10b0   :  { %v4396_v33 = vpop.eup %4395 }
0x10b1   :  { %v1963_v37 = vmul.f32 %v4396_v33, %v1957_v21 }
0x10b2   :  { %v4398_v54 = vpop.eup %4397 }
0x10b3   :  { %v1961_v40 = vmul.f32 %v4398_v54, %v1956_v34  ;;  %v1969_v44 = vadd.f32 %v1967_v38, %v1963_v37 }
0x10b5   :  { %v1968_v42 = vadd.f32 %v1967_v38, %v1961_v40 }
0x10b7   :  { %4200 = vmatprep.mubr.msk.f32.mxu1 %vm44_vm0, %v1968_v42 }
0x10b8   :  { %4201 = vmatmul.mubr.msk.f32.vlgmr.msra.gmra.mxu1 %vm44_vm0, %v1969_v44 }
0x10b9   :  { %4205 = vmatprep.mubr.msk.f32.mxu1 %vm4471_vm5, %v4470_v51 }
0x1178   :  { %v4202_v46 = vpop.f32.mrf.mxu1 }
0x1179   :  { %v4954_v48 = vadd.f32 %v4202_v46, %v2063_v1  ;;  %v4970_v59 = vadd.f32 %v4202_v46, %v2054_v49 }
0x117a   :  { %v2042_v47 = vpop.f32.mrf.mxu1 }
0x117b   :  { %v4950_v0 = vadd.f32 %v2063_v1, %v2042_v47  ;;  %v4962_v27 = vadd.f32 %v2054_v49, %v2042_v47 }
0x117d   :  { %2078 = vrot.lane.b32.xlu1 %v4950_v0, %s4472_s19 }
0x1181   :  { %2156 = vrot.lane.b32.xlu1 %v4954_v48, %s4472_s19 }
0x11ef   :  { %v2079_v53 = vpop.permute.xlu1 %2078 }
0x11f0   :  { %4204 = vmatpush3.xpose.msk.msra.mxu1 %vm209_vm6, %v2079_v53 }
0x11f1   :  { %4208 = vmatprep.subr.mxu1 %v4470_v51 }
0x11f3   :  { %4206 = vmatmul.mubr.msk.f32.vlgmr.msra.gmra.mxu1 %vm209_vm6, %v4962_v27  ;;  %v2157_v14 = vpop.permute.xlu1 %2156 }
0x11f4   :  { %4209 = vmatpush3.xpose.msk.msra.mxu1 %vm209_vm6, %v2157_v14  ;;  %4210 = vmatprep.mubr.msk.f32.mxu1 %vm4471_vm5, %v4470_v51 }
0x11f5   :  { %4218 = vmatprep.subr.mxu1 %v4470_v51 }
0x11f7   :  { %4211 = vmatmul.mubr.msk.f32.vlgmr.msra.gmra.mxu1 %vm209_vm6, %v4970_v59 }
0x11f8   :  { %4220 = vmatprep.mubr.msk.f32.mxu1 %vm4471_vm5, %v4470_v51 }
0x12b3   :  { %v2151_v57 = vpop.f32.mrf.mxu1 }
0x12b4   :  { %v2152_v15 = vadd.f32 %v2151_v57, %v4643_v4 }
0x12b5   :  { %v4207_v16 = vpop.f32.mrf.mxu1 }
0x12b6   :  { %v2233_v35 = vsel %vm209_vm6, %v2152_v15, -inf }
0x12b7   :  { %2234 = vmax.xlane.f32.xlu1 %v2233_v35  ;;  %v2229_v61 = vpop.f32.mrf.mxu1 }
0x12b8   :  { %v2230_v63 = vadd.f32 %v2229_v61, %v4646_v8 }
0x12b9   :  { %v4212_v2 = vpop.f32.mrf.mxu1 }
0x12ba   :  { %v2236_v36 = vsel %vm209_vm6, %v2230_v63, -inf }
0x12bb   :  { %2237 = vmax.xlane.f32.xlu0 %v2236_v36 }
0x12d1   :  { %2072 = vrot.lane.b32.xlu0 %v2070_v3, %s4473_s1 }
0x1340   :  { %v2235_v22 = vpop.xlane.xlu1 %2234 }
0x1341   :  { %v2239_v55 = vsub.f32 %v2152_v15, %v2235_v22 }
0x1343   :  { %v2241_v56 = vmul.f32 1.442695, %v2239_v55 }
0x1344   :  { %v2238_v26 = vpop.xlane.xlu0 %2237 }
0x1345   :  { %v2240_v62 = vsub.f32 %v2230_v63, %v2238_v26  ;;  %4399 = vpow2.f32 %v2241_v56 }
0x1347   :  { %v2243_v11 = vmul.f32 1.442695, %v2240_v62 }
0x1348   :  { %v2073_v18 = vpop.permute.xlu0 %2072 }
0x1349   :  { %v4985_v9 = vadd.f32 %v2073_v18, %v2042_v47  ;;  %v4987_v10 = vadd.f32 %v4202_v46, %v2073_v18  ;;  %4401 = vpow2.f32 %v2243_v11 }
0x134b   :  { %2333 = vrot.lane.b32.xlu0 %v4987_v10, %s4473_s1  ;;  %2256 = vrot.lane.b32.xlu1 %v4985_v9, %s4473_s1 }
0x134f   :  { %2411 = vrot.lane.b32.xlu0 %v4950_v0, %s4474_s24  ;;  %2489 = vrot.lane.b32.xlu1 %v4954_v48, %s4474_s24 }
0x1352   :  { %v4400_v17 = vpop.eup %4399 }
0x1353   :  { %2409 = vrot.lane.b32.xlu0 %v4962_v27, %s4475_s25  ;;  %v2245_v23 = vsel %vm209_vm6, %v4400_v17, 0.0 }
0x1356   :  { %v4402_v24 = vpop.eup %4401 }
0x1357   :  { %v2248_v25 = vsel %vm209_vm6, %v4402_v24, 0.0 }
0x1373   :  { %2246 = vadd.xlane.f32.xlu1 %v2245_v23 }
0x1377   :  { %2249 = vadd.xlane.f32.xlu1 %v2248_v25 }
0x1388   :  { %2487 = vrot.lane.b32.xlu1 %v4970_v59, %s4475_s25 }
0x13bd   :  { %v2334_v28 = vpop.permute.xlu0 %2333  ;;  %v2257_v29 = vpop.permute.xlu1 %2256 }
0x13be   :  { %4214 = vmatpush3.msra.mxu0 %v2257_v29  ;;  %4219 = vmatpush3.msra.mxu1 %v2334_v28 }
0x13bf   :  { %4223 = vmatprep.subr.mxu0 %v4470_v51  ;;  %4228 = vmatprep.subr.mxu1 %v4470_v51 }
0x13c1   :  { %v2490_v20 = vpop.permute.xlu1 %2489  ;;  %v2412_v32 = vpop.permute.xlu0 %2411 }
0x13c5   :  { %v2410_v54 = vpop.permute.xlu0 %2409 }
0x13fc   :  { %v2247_v60 = vpop.xlane.xlu1 %2246 }
0x13fd   :  { %4403 = vrcp.f32 %v2247_v60 }
0x1400   :  { %v2250_v30 = vpop.xlane.xlu1 %2249 }
0x1401   :  { %4405 = vrcp.f32 %v2250_v30 }
0x1404   :  { %v2488_v37 = vpop.permute.xlu1 %2487 }
0x140a   :  { %v4404_v31 = vpop.eup %4403 }
0x140b   :  { %v2253_v33 = vmul.f32 %v4404_v31, %v4400_v17 }
0x140d   :  { %4216 = vmatmul.mubr.msk.f32.vlgmr.msra.gmra.mxu0 %vm209_vm6, %v2253_v33 }
0x140e   :  { %v4406_v21 = vpop.eup %4405  ;;  %4224 = vmatpush3.xpose.msk.msra.mxu0 %vm209_vm6, %v2412_v32  ;;  %4225 = vmatprep.mubr.msk.f32.mxu0 %vm4471_vm5, %v4470_v51 }
0x140f   :  { %v2254_v34 = vmul.f32 %v4406_v21, %v4402_v24  ;;  %4233 = vmatprep.subr.mxu0 %v4470_v51 }
0x1411   :  { %4221 = vmatmul.mubr.msk.f32.vlgmr.msra.gmra.mxu1 %vm209_vm6, %v2254_v34  ;;  %4226 = vmatmul.mubr.msk.f32.vlgmr.msra.gmra.mxu0 %vm209_vm6, %v2410_v54 }
0x1412   :  { %4229 = vmatpush3.xpose.msk.msra.mxu1 %vm209_vm6, %v2490_v20  ;;  %4230 = vmatprep.mubr.msk.f32.mxu1 %vm4471_vm5, %v4470_v51 }
0x1413   :  { %4238 = vmatprep.subr.mxu1 %v4470_v51  ;;  %4235 = vmatprep.mubr.msk.f32.mxu0 %vm4471_vm5, %v4470_v51 }
0x1415   :  { %4231 = vmatmul.mubr.msk.f32.vlgmr.msra.gmra.mxu1 %vm209_vm6, %v2488_v37 }
0x1416   :  { %4240 = vmatprep.mubr.msk.f32.mxu1 %vm4471_vm5, %v4470_v51 }
0x14cd   :  { %v5021_v38 = vpop.f32.mrf.mxu0 }
0x14cf   :  { %v4217_v40 = vpop.f32.mrf.mxu0 }
0x14d1   :  { %v5023_v42 = vpop.f32.mrf.mxu1  ;;  %v2483_v44 = vpop.f32.mrf.mxu0 }
0x14d2   :  { %v2484_v46 = vadd.f32 %v2483_v44, %v4643_v4 }
0x14d3   :  { %v4222_v1 = vpop.f32.mrf.mxu1  ;;  %v4227_v47 = vpop.f32.mrf.mxu0 }
0x14d4   :  { %v2565_v49 = vsel %vm209_vm6, %v2484_v46, -inf }
0x14d5   :  { %2566 = vmax.xlane.f32.xlu0 %v2565_v49  ;;  %v2561_v53 = vpop.f32.mrf.mxu1 }
0x14d6   :  { %v2562_v14 = vadd.f32 %v2561_v53, %v4646_v8 }
0x14d7   :  { %v4232_v57 = vpop.f32.mrf.mxu1 }
0x14d8   :  { %v2568_v15 = vsel %vm209_vm6, %v2562_v14, -inf }
0x14d9   :  { %2569 = vmax.xlane.f32.xlu1 %v2568_v15 }
0x14ea   :  { %2663 = vrot.lane.b32.xlu1 %v4987_v10, %s4476_s26 }
0x14eb   :  { %2587 = vrot.lane.b32.xlu0 %v4985_v9, %s4476_s26 }
0x14ee   :  { %2741 = vrot.lane.b32.xlu1 %v4950_v0, %s4477_s27 }
0x14f2   :  { %2819 = vrot.lane.b32.xlu1 %v4954_v48, %s4477_s27 }
0x14f6   :  { %2817 = vrot.lane.b32.xlu1 %v4970_v59, %s4478_s28 }
0x155e   :  { %v2567_v16 = vpop.xlane.xlu0 %2566 }
0x155f   :  { %v2571_v35 = vsub.f32 %v2484_v46, %v2567_v16 }
0x1561   :  { %v2573_v61 = vmul.f32 1.442695, %v2571_v35 }
0x1562   :  { %v2588_v63 = vpop.permute.xlu0 %2587  ;;  %v2570_v2 = vpop.xlane.xlu1 %2569 }
0x1563   :  { %4407 = vpow2.f32 %v2573_v61  ;;  %v2572_v36 = vsub.f32 %v2562_v14, %v2570_v2  ;;  %4234 = vmatpush3.msra.mxu0 %v2588_v63 }
0x1564   :  { %4243 = vmatprep.subr.mxu0 %v4470_v51 }
0x1565   :  { %v2575_v3 = vmul.f32 1.442695, %v2572_v36 }
0x1566   :  { %v2664_v26 = vpop.permute.xlu1 %2663 }
0x1567   :  { %4409 = vpow2.f32 %v2575_v3  ;;  %4239 = vmatpush3.msra.mxu1 %v2664_v26 }
0x1568   :  { %4248 = vmatprep.subr.mxu1 %v4470_v51 }
0x156a   :  { %v2742_v17 = vpop.permute.xlu1 %2741 }
0x156e   :  { %v2820_v28 = vpop.permute.xlu1 %2819 }
0x1570   :  { %v4408_v18 = vpop.eup %4407 }
0x1571   :  { %v2577_v22 = vsel %vm209_vm6, %v4408_v18, 0.0 }
0x1572   :  { %2578 = vadd.xlane.f32.xlu0 %v2577_v22  ;;  %v2818_v60 = vpop.permute.xlu1 %2817 }
0x1574   :  { %v4410_v55 = vpop.eup %4409 }
0x1575   :  { %v2580_v56 = vsel %vm209_vm6, %v4410_v55, 0.0 }
0x1576   :  { %2581 = vadd.xlane.f32.xlu0 %v2580_v56 }
0x158c   :  { %2739 = vrot.lane.b32.xlu0 %v4962_v27, %s4478_s28 }
0x15fb   :  { %v2579_v62 = vpop.xlane.xlu0 %2578 }
0x15fc   :  { %4411 = vrcp.f32 %v2579_v62 }
0x15ff   :  { %v2582_v11 = vpop.xlane.xlu0 %2581 }
0x1600   :  { %4413 = vrcp.f32 %v2582_v11 }
0x1603   :  { %v2740_v20 = vpop.permute.xlu0 %2739 }
0x1609   :  { %v4412_v23 = vpop.eup %4411 }
0x160a   :  { %v2585_v24 = vmul.f32 %v4412_v23, %v4408_v18 }
0x160c   :  { %4236 = vmatmul.mubr.msk.f32.vlgmr.msra.gmra.mxu0 %vm209_vm6, %v2585_v24 }
0x160d   :  { %v4414_v25 = vpop.eup %4413  ;;  %4244 = vmatpush3.xpose.msk.msra.mxu0 %vm209_vm6, %v2742_v17  ;;  %4245 = vmatprep.mubr.msk.f32.mxu0 %vm4471_vm5, %v4470_v51 }
0x160e   :  { %v2586_v29 = vmul.f32 %v4414_v25, %v4410_v55  ;;  %4253 = vmatprep.subr.mxu0 %v4470_v51 }
0x1610   :  { %4241 = vmatmul.mubr.msk.f32.vlgmr.msra.gmra.mxu1 %vm209_vm6, %v2586_v29  ;;  %4246 = vmatmul.mubr.msk.f32.vlgmr.msra.gmra.mxu0 %vm209_vm6, %v2740_v20 }
0x1611   :  { %4249 = vmatpush3.xpose.msk.msra.mxu1 %vm209_vm6, %v2820_v28  ;;  %4250 = vmatprep.mubr.msk.f32.mxu1 %vm4471_vm5, %v4470_v51 }
0x1612   :  { %4258 = vmatprep.subr.mxu1 %v4470_v51  ;;  %4255 = vmatprep.mubr.msk.f32.mxu0 %vm4471_vm5, %v4470_v51 }
0x1614   :  { %4251 = vmatmul.mubr.msk.f32.vlgmr.msra.gmra.mxu1 %vm209_vm6, %v2818_v60 }
0x1615   :  { %4260 = vmatprep.mubr.msk.f32.mxu1 %vm4471_vm5, %v4470_v51 }
0x16cc   :  { %v5061_v30 = vpop.f32.mrf.mxu0 }
0x16ce   :  { %v4237_v31 = vpop.f32.mrf.mxu0 }
0x16d0   :  { %v5063_v32 = vpop.f32.mrf.mxu1  ;;  %v2813_v33 = vpop.f32.mrf.mxu0 }
0x16d1   :  { %v2814_v21 = vadd.f32 %v2813_v33, %v4643_v4 }
0x16d2   :  { %v4242_v34 = vpop.f32.mrf.mxu1  ;;  %v4247_v54 = vpop.f32.mrf.mxu0 }
0x16d3   :  { %v2895_v37 = vsel %vm209_vm6, %v2814_v21, -inf }
0x16d4   :  { %2896 = vmax.xlane.f32.xlu0 %v2895_v37  ;;  %v2891_v40 = vpop.f32.mrf.mxu1 }
0x16d5   :  { %v2892_v44 = vadd.f32 %v2891_v40, %v4646_v8 }
0x16d6   :  { %v4252_v46 = vpop.f32.mrf.mxu1 }
0x16d7   :  { %v2898_v1 = vsel %vm209_vm6, %v2892_v44, -inf }
0x16d8   :  { %2899 = vmax.xlane.f32.xlu1 %v2898_v1 }
0x16e9   :  { %2993 = vrot.lane.b32.xlu1 %v4987_v10, %s4479_s29 }
0x16ea   :  { %2917 = vrot.lane.b32.xlu0 %v4985_v9, %s4479_s29 }
0x16ed   :  { %3071 = vrot.lane.b32.xlu1 %v4950_v0, %s4480_s30 }
0x16f1   :  { %3149 = vrot.lane.b32.xlu1 %v4954_v48, %s4480_s30 }
0x16f5   :  { %3147 = vrot.lane.b32.xlu1 %v4970_v59, %s4481_s0 }
0x175d   :  { %v2897_v47 = vpop.xlane.xlu0 %2896 }
0x175e   :  { %v2901_v49 = vsub.f32 %v2814_v21, %v2897_v47 }
0x1760   :  { %v2903_v53 = vmul.f32 1.442695, %v2901_v49 }
0x1761   :  { %v2918_v14 = vpop.permute.xlu0 %2917  ;;  %v2900_v57 = vpop.xlane.xlu1 %2899 }
0x1762   :  { %4415 = vpow2.f32 %v2903_v53  ;;  %v2902_v15 = vsub.f32 %v2892_v44, %v2900_v57  ;;  %4254 = vmatpush3.msra.mxu0 %v2918_v14 }
0x1763   :  { %4263 = vmatprep.subr.mxu0 %v4470_v51 }
0x1764   :  { %v2905_v16 = vmul.f32 1.442695, %v2902_v15 }
0x1765   :  { %v2994_v35 = vpop.permute.xlu1 %2993 }
0x1766   :  { %4417 = vpow2.f32 %v2905_v16  ;;  %4259 = vmatpush3.msra.mxu1 %v2994_v35 }
0x1767   :  { %4268 = vmatprep.subr.mxu1 %v4470_v51 }
0x1769   :  { %v3072_v36 = vpop.permute.xlu1 %3071 }
0x176d   :  { %v3150_v22 = vpop.permute.xlu1 %3149 }
0x176f   :  { %v4416_v0 = vpop.eup %4415 }
0x1770   :  { %v2907_v48 = vsel %vm209_vm6, %v4416_v0, 0.0 }
0x1771   :  { %2908 = vadd.xlane.f32.xlu0 %v2907_v48  ;;  %v3148_v56 = vpop.permute.xlu1 %3147 }
0x1773   :  { %v4418_v59 = vpop.eup %4417 }
0x1774   :  { %v2910_v61 = vsel %vm209_vm6, %v4418_v59, 0.0 }
0x1775   :  { %2911 = vadd.xlane.f32.xlu0 %v2910_v61 }
0x178b   :  { %3069 = vrot.lane.b32.xlu0 %v4962_v27, %s4481_s0 }
0x17fa   :  { %v2909_v63 = vpop.xlane.xlu0 %2908 }
0x17fb   :  { %4419 = vrcp.f32 %v2909_v63 }
0x17fe   :  { %v2912_v2 = vpop.xlane.xlu0 %2911 }
0x17ff   :  { %4421 = vrcp.f32 %v2912_v2 }
0x1802   :  { %v3070_v27 = vpop.permute.xlu0 %3069 }
0x1808   :  { %v4420_v3 = vpop.eup %4419 }
0x1809   :  { %v2915_v26 = vmul.f32 %v4420_v3, %v4416_v0 }
0x180b   :  { %4256 = vmatmul.mubr.msk.f32.vlgmr.msra.gmra.mxu0 %vm209_vm6, %v2915_v26 }
0x180c   :  { %v4422_v18 = vpop.eup %4421  ;;  %4264 = vmatpush3.xpose.msk.msra.mxu0 %vm209_vm6, %v3072_v36  ;;  %4265 = vmatprep.mubr.msk.f32.mxu0 %vm4471_vm5, %v4470_v51 }
0x180d   :  { %v2916_v55 = vmul.f32 %v4422_v18, %v4418_v59  ;;  %4273 = vmatprep.subr.mxu0 %v4470_v51 }
0x180f   :  { %4261 = vmatmul.mubr.msk.f32.vlgmr.msra.gmra.mxu1 %vm209_vm6, %v2916_v55  ;;  %4266 = vmatmul.mubr.msk.f32.vlgmr.msra.gmra.mxu0 %vm209_vm6, %v3070_v27 }
0x1810   :  { %4269 = vmatpush3.xpose.msk.msra.mxu1 %vm209_vm6, %v3150_v22  ;;  %4270 = vmatprep.mubr.msk.f32.mxu1 %vm4471_vm5, %v4470_v51 }
0x1811   :  { %4278 = vmatprep.subr.mxu1 %v4470_v51  ;;  %4275 = vmatprep.mubr.msk.f32.mxu0 %vm4471_vm5, %v4470_v51 }
0x1813   :  { %4271 = vmatmul.mubr.msk.f32.vlgmr.msra.gmra.mxu1 %vm209_vm6, %v3148_v56 }
0x1814   :  { %4280 = vmatprep.mubr.msk.f32.mxu1 %vm4471_vm5, %v4470_v51 }
0x18cb   :  { %v2989_v62 = vpop.f32.mrf.mxu0 }
0x18cd   :  { %v4257_v11 = vpop.f32.mrf.mxu0 }
0x18cf   :  { %v3065_v17 = vpop.f32.mrf.mxu1  ;;  %v3143_v23 = vpop.f32.mrf.mxu0 }
0x18d0   :  { %v3144_v24 = vadd.f32 %v3143_v23, %v4643_v4 }
0x18d1   :  { %v4262_v25 = vpop.f32.mrf.mxu1  ;;  %v4267_v28 = vpop.f32.mrf.mxu0 }
0x18d2   :  { %v3225_v29 = vsel %vm209_vm6, %v3144_v24, -inf }
0x18d3   :  { %3226 = vmax.xlane.f32.xlu0 %v3225_v29  ;;  %v3221_v20 = vpop.f32.mrf.mxu1 }
0x18d4   :  { %v3222_v60 = vadd.f32 %v3221_v20, %v4646_v8 }
0x18d5   :  { %v4272_v31 = vpop.f32.mrf.mxu1 }
0x18d6   :  { %v3228_v33 = vsel %vm209_vm6, %v3222_v60, -inf }
0x18d7   :  { %3229 = vmax.xlane.f32.xlu1 %v3228_v33  ;;  %v3924_v33 = vld [vmem:[%s5228_s3 + $0x38] sm:$0xff] }
0x18e8   :  { %3323 = vrot.lane.b32.xlu1 %v4987_v10, %s4482_s9 }
0x18ec   :  { %3439 = vrot.lane.b32.xlu1 %v4907_v5, %s4469_s18 }
0x18f0   :  { %3437 = vrot.lane.b32.xlu1 %v4912_v6, %s4469_s18 }
0x18f4   :  { %3435 = vrot.lane.b32.xlu1 %v4919_v43, %s4469_s18 }
0x18f8   :  { %3409 = vrot.lane.b32.xlu1 %v2989_v62, %s4483_s10 }
0x195c   :  { %v3227_v51 = vpop.xlane.xlu0 %3226 }
0x195d   :  { %v3231_v4 = vsub.f32 %v3144_v24, %v3227_v51  ;;  %v3923_v51 = vld [vmem:[%s5228_s3 + $0x30] sm:$0xff] }
0x195f   :  { %v3233_v8 = vmul.f32 1.442695, %v3231_v4  ;;  %v3922_v4 = vld [vmem:[%s5228_s3 + $0x28] sm:$0xff] }
0x1960   :  { %v3230_v21 = vpop.xlane.xlu1 %3229 }
0x1961   :  { %4423 = vpow2.f32 %v3233_v8  ;;  %v3232_v34 = vsub.f32 %v3222_v60, %v3230_v21  ;;  %v3921_v8 = vld [vmem:[%s5228_s3 + $0x20] sm:$0xff]  ;;  %v3936_v21 = vld [vmem:[%s5229_s4 + $0x78] sm:$0xff] }
0x1963   :  { %v3235_v54 = vmul.f32 1.442695, %v3232_v34  ;;  %v3935_v34 = vld [vmem:[%s5229_s4 + $0x70] sm:$0xff] }
0x1964   :  { %v3324_v37 = vpop.permute.xlu1 %3323 }
0x1965   :  { %4425 = vpow2.f32 %v3235_v54  ;;  %4279 = vmatpush3.msra.mxu1 %v3324_v37  ;;  %v3934_v54 = vld [vmem:[%s5229_s4 + $0x68] sm:$0xff]  ;;  %v3933_v37 = vld [vmem:[%s5229_s4 + $0x60] sm:$0xff] }
0x1966   :  { %4294 = vmatprep.subr.mxu1 %v3924_v33 }
0x1968   :  { %v3440_v46 = vpop.permute.xlu1 %3439 }
0x196c   :  { %v3438_v47 = vpop.permute.xlu1 %3437 }
0x196e   :  { %v4424_v10 = vpop.eup %4423 }
0x196f   :  { %v3237_v5 = vsel %vm209_vm6, %v4424_v10, 0.0 }
0x1970   :  { %3238 = vadd.xlane.f32.xlu0 %v3237_v5  ;;  %v3436_v53 = vpop.permute.xlu1 %3435 }
0x1972   :  { %v4426_v6 = vpop.eup %4425 }
0x1973   :  { %v3240_v40 = vsel %vm209_vm6, %v4426_v6, 0.0 }
0x1974   :  { %3241 = vadd.xlane.f32.xlu0 %v3240_v40  ;;  %v3410_v59 = vpop.permute.xlu1 %3409 }
0x198a   :  { %3247 = vrot.lane.b32.xlu0 %v4985_v9, %s4482_s9 }
0x198e   :  { %3401 = vrot.lane.b32.xlu0 %v5061_v30, %s4484_s11 }
0x1992   :  { %3403 = vrot.lane.b32.xlu0 %v5063_v32, %s4484_s11 }
0x1996   :  { %3411 = vrot.lane.b32.xlu0 %v3065_v17, %s4483_s10 }
0x199a   :  { %3433 = vrot.lane.b32.xlu0 %v4926_v45, %s4469_s18 }
0x19f9   :  { %v3239_v43 = vpop.xlane.xlu0 %3238 }
0x19fa   :  { %4427 = vrcp.f32 %v3239_v43 }
0x19fd   :  { %v3242_v44 = vpop.xlane.xlu0 %3241 }
0x19fe   :  { %4429 = vrcp.f32 %v3242_v44 }
0x1a01   :  { %v3248_v1 = vpop.permute.xlu0 %3247 }
0x1a02   :  { %4274 = vmatpush3.msra.mxu0 %v3248_v1 }
0x1a03   :  { %4283 = vmatprep.subr.mxu0 %v3440_v46 }
0x1a05   :  { %v3402_v45 = vpop.permute.xlu0 %3401 }
0x1a06   :  { %v3423_v61 = vsel %vm209_vm6, %v5021_v38, %v3402_v45  ;;  %v3531_v38 = vrot.slane %v4936_v7, %v1662_v52 }
0x1a07   :  { %v4428_v9 = vpop.eup %4427  ;;  %v3425_v63 = vsel %vm1555_vm7, %v3423_v61, %v3410_v59 }
0x1a08   :  { %v3245_v49 = vmul.f32 %v4428_v9, %v4424_v10 }
0x1a09   :  { %v3404_v14 = vpop.permute.xlu0 %3403 }
0x1a0a   :  { %4276 = vmatmul.mubr.msk.f32.vlgmr.msra.gmra.mxu0 %vm209_vm6, %v3245_v49  ;;  %v3424_v3 = vsel %vm209_vm6, %v5023_v42, %v3404_v14 }
0x1a0b   :  { %v4430_v30 = vpop.eup %4429  ;;  %4284 = vmatpush3.msra.mxu0 %v3440_v46 }
0x1a0c   :  { %v3246_v32 = vmul.f32 %v4430_v30, %v4426_v6  ;;  %4285 = vmatprep.subr.mxu0 %v3438_v47 }
0x1a0d   :  { %4286 = vmatpush3.msra.mxu0 %v3438_v47  ;;  %v3412_v57 = vpop.permute.xlu0 %3411 }
0x1a0e   :  { %4281 = vmatmul.mubr.msk.f32.vlgmr.msra.gmra.mxu1 %vm209_vm6, %v3246_v32  ;;  %4287 = vmatprep.subr.mxu0 %v3436_v53  ;;  %v3426_v26 = vsel %vm1555_vm7, %v3424_v3, %v3412_v57  ;;  %v3571_v57 = vrot.slane %v4936_v7, %v1702_v12  ;;  %v3932_v12 = vld [vmem:[%s5229_s4 + $0x58] sm:$0xff] }
0x1a0f   :  { %4288 = vmatpush3.msra.mxu0 %v3436_v53  ;;  %4295 = vmatpush3.msra.mxu1 %v3924_v33 }
0x1a10   :  { %4296 = vmatprep.subr.mxu1 %v3923_v51 }
0x1a11   :  { %v3434_v15 = vpop.permute.xlu0 %3433  ;;  %4297 = vmatpush3.msra.mxu1 %v3923_v51 }
0x1a12   :  { %4289 = vmatprep.subr.mxu0 %v3434_v15  ;;  %4298 = vmatprep.subr.mxu1 %v3922_v4 }
0x1a13   :  { %4290 = vmatpush3.msra.mxu0 %v3434_v15  ;;  %4299 = vmatpush3.msra.mxu1 %v3922_v4 }
0x1a14   :  { %4300 = vmatprep.subr.mxu1 %v3921_v8  ;;  %4305 = vmatprep.subr.mxu0 %v3936_v21 }
0x1a15   :  { %4301 = vmatpush3.msra.mxu1 %v3921_v8 }
0x1aca   :  { %v3319_v16 = vpop.f32.mrf.mxu0 }
0x1acb   :  { %3417 = vrot.lane.b32.xlu1 %v3319_v16, %s4485_s12  ;;  %v3583_v16 = vrot.slane %v4936_v7, %v1714_v13  ;;  %v3930_v13 = vld [vmem:[%s5229_s4 + $0x48] sm:$0xff]  ;;  %v3929_v7 = vld [vmem:[%s5229_s4 + $0x40] sm:$0xff] }
0x1acc   :  { %v4277_v35 = vpop.f32.mrf.mxu0 }
0x1ace   :  { %v3395_v0 = vpop.f32.mrf.mxu1 }
0x1acf   :  { %3419 = vrot.lane.b32.xlu1 %v3395_v0, %s4485_s12 }
0x1ad0   :  { %v4282_v48 = vpop.f32.mrf.mxu1 }
0x1b3d   :  { %v3418_v2 = vpop.permute.xlu1 %3417 }
0x1b3e   :  { %v3427_v36 = vsel %vm1558_vm8, %v3425_v63, %v3418_v2 }
0x1b3f   :  { %4291 = vmatprep.mubr.msk.f32.mxu0 %vm44_vm0, %v3427_v36  ;;  %v3926_v36 = vld [vmem:[%s5231_s6 + $0x1] ss:$0 sm:$0xff]  ;;  %s4486_s6 = smov [#allocation2]  }
0x1b40   :  { %s3840_s1 = sshll.u32 %s4486_s6, 4  ;;  %s3841_s1 = int_to_ptr.vmem [resolvable:$true] %s3840_s1 }
0x1b41   :  { %v3420_v18 = vpop.permute.xlu1 %3419  ;;  %p4452_p1 = scmp.lt.s32.totalorder %s3841_s1, %s3841_s1 }
0x1b42   :  { %v3428_v22 = vsel %vm1558_vm8, %v3426_v26, %v3420_v18 }
0x1b43   :  { %4292 = vmatmul.mubr.msk.f32.vlgmr.msra.gmra.mxu0 %vm44_vm0, %v3428_v22 }
0x1b44   :  { %4306 = vmatpush3.msra.mxu0 %v3936_v21 }
0x1b45   :  { %4307 = vmatprep.subr.mxu0 %v3935_v34 }
0x1b46   :  { %4308 = vmatpush3.msra.mxu0 %v3935_v34 }
0x1b47   :  { %4309 = vmatprep.subr.mxu0 %v3934_v54 }
0x1b48   :  { %4310 = vmatpush3.msra.mxu0 %v3934_v54 }
0x1b49   :  { %4311 = vmatprep.subr.mxu0 %v3933_v37 }
0x1b4a   :  { %4312 = vmatpush3.msra.mxu0 %v3933_v37 }
0x1b4b   :  { %4313 = vmatprep.subr.mxu0 %v3932_v12 }
0x1b4c   :  { %4314 = vmatpush3.msra.mxu0 %v3932_v12 }
0x1b4d   :  { %4315 = vmatprep.subr.mxu0 %v3931_v19 }
0x1b4e   :  { %4316 = vmatpush3.msra.mxu0 %v3931_v19 }
0x1b4f   :  { %4317 = vmatprep.subr.mxu0 %v3930_v13 }
0x1b50   :  { %4318 = vmatpush3.msra.mxu0 %v3930_v13 }
0x1b51   :  { %4319 = vmatprep.subr.mxu0 %v3929_v7 }
0x1b52   :  { %4320 = vmatpush3.msra.mxu0 %v3929_v7 }
0x1c03   :  { %v4293_v55 = vpop.f32.mrf.mxu0 }
0x1c04   :  { %v3527_v27 = vadd.f32 %v4293_v55, %v4891_v50 }
0x1c05   :  { %v3517_v56 = vpop.f32.mrf.mxu0 }
0x1c06   :  { %v5143_v62 = vadd.f32 %v3531_v38, %v3527_v27  ;;  %v3526_v11 = vadd.f32 %v3517_v56, %v4894_v58  ;;  %v3939_v27 = vld [vmem:[%s5230_s5 + $0x18] ss:$0 sm:$0xff] }
0x1c08   :  { %v5146_v42 = vadd.f32 %v3531_v38, %v3526_v11  ;;  %v3537_v17 = vsel %vm44_vm0, %v5143_v62, 0.0 }
0x1c09   :  { %3538 = vadd.xlane.f32.xlu1 %v3537_v17 }
0x1c0a   :  { %v3534_v23 = vsel %vm44_vm0, %v5146_v42, 0.0 }
0x1c0b   :  { %3535 = vadd.xlane.f32.xlu0 %v3534_v23 }
0x1c92   :  { %v3539_v24 = vpop.xlane.xlu1 %3538 }
0x1c93   :  { %v3541_v52 = vmul.f32 0.03125, %v3539_v24 }
0x1c94   :  { %v3536_v25 = vpop.xlane.xlu0 %3535 }
0x1c95   :  { %v3540_v28 = vmul.f32 0.03125, %v3536_v25  ;;  %v3543_v50 = vsub.f32 %v5143_v62, %v3541_v52 }
0x1c97   :  { %v3542_v29 = vsub.f32 %v5146_v42, %v3540_v28  ;;  %v3545_v60 = vmul.f32 %v3543_v50, %v3543_v50  ;;  %v3573_v48 = vmul.f32 %v3571_v57, %v3543_v50 }
0x1c99   :  { %v3544_v20 = vmul.f32 %v3542_v29, %v3542_v29  ;;  %v3549_v31 = vsel %vm44_vm0, %v3545_v60, 0.0  ;;  %v3572_v15 = vmul.f32 %v3571_v57, %v3542_v29 }
0x1c9b   :  { %v3546_v58 = vsel %vm44_vm0, %v3544_v20, 0.0 }
0x1c9c   :  { %3547 = vadd.xlane.f32.xlu0 %v3546_v58 }
0x1ca0   :  { %3550 = vadd.xlane.f32.xlu0 %v3549_v31 }
0x1d25   :  { %v3548_v10 = vpop.xlane.xlu0 %3547 }
0x1d26   :  { %v3552_v5 = vmul.f32 0.032258064, %v3548_v10 }
0x1d28   :  { %4431 = vrsqrt.f32 %v3552_v5  ;;  %vm3556_vm3 = vcmp.eq.f32.partialorder %v3552_v5, inf  ;;  %v3559_v46 = vand.u32 2147483648, %v3552_v5  ;;  %vm3558_vm4 = vcmp.eq.f32.partialorder %v3552_v5, 0.0 }
0x1d29   :  { %v3551_v6 = vpop.xlane.xlu0 %3550 }
0x1d2a   :  { %v3553_v40 = vmul.f32 0.032258064, %v3551_v6 }
0x1d2c   :  { %4433 = vrsqrt.f32 %v3553_v40  ;;  %vm3563_vm5 = vcmp.eq.f32.partialorder %v3553_v40, inf  ;;  %v3566_v32 = vand.u32 2147483648, %v3553_v40  ;;  %vm3565_vm6 = vcmp.eq.f32.partialorder %v3553_v40, 0.0 }
0x1d35   :  { %v4432_v43 = vpop.eup %4431 }
0x1d36   :  { %v3555_v44 = vmul.f32 %v4432_v43, %v3552_v5 }
0x1d38   :  { %v3557_v1 = vsel %vm3556_vm3, %v3552_v5, %v3555_v44 }
0x1d39   :  { %v4434_v9 = vpop.eup %4433  ;;  %v3560_v47 = vsel %vm3558_vm4, %v3559_v46, %v3557_v1 }
0x1d3a   :  { %v3574_v49 = vadd.f32 1e-06, %v3560_v47  ;;  %v3562_v30 = vmul.f32 %v4434_v9, %v3553_v40 }
0x1d3c   :  { %4435 = vrcp.f32 %v3574_v49  ;;  %v3564_v53 = vsel %vm3563_vm5, %v3553_v40, %v3562_v30  ;;  %v3780_v49 = vld [vmem:[%s5232_s7] sm:$0x3]  ;;  %s4447_s7 = scalar_lea.vmem %s3841_s1, 256 }
0x1d3d   :  { %v3567_v45 = vsel %vm3565_vm6, %v3566_v32, %v3564_v53  ;;  %v3818_v30 = vrot.slane %v3780_v49, %v4592_v39  ;;  %v3830_v32 = vrot.slane %v3780_v49, %v4597_v41  ;;  %p4448_p0 = scmp.ne.s32.totalorder %s3841_s1, %s4447_s7  ;;  %p4453_p2 = scmp.lt.s32.totalorder %s4447_s7, %s4447_s7 }
0x1d3e   :  { %v3575_v14 = vadd.f32 1e-06, %v3567_v45 }
0x1d3f   :  { %p4454_p3 = por %p4453_p2, %p4452_p1 }
0x1d40   :  { %4437 = vrcp.f32 %v3575_v14 }
0x1d41   :  { %p4455_p4 = pnand %p4454_p3, %p4448_p0 }
0x1d49   :  { %v4436_v35 = vpop.eup %4435 }
0x1d4a   :  { %v3577_v0 = vmul.f32 %v4436_v35, %v3572_v15 }
0x1d4c   :  { %v3584_v59 = vadd.f32 %v3583_v16, %v3577_v0 }
0x1d4d   :  { %v4438_v61 = vpop.eup %4437 }
0x1d4e   :  { %v3579_v63 = vmul.f32 %v4438_v61, %v3573_v48  ;;  %4302 = vmatprep.mubr.msk.f32.mxu1 %vm44_vm0, %v3584_v59 }
0x1d50   :  { %v3585_v2 = vadd.f32 %v3583_v16, %v3579_v63 }
0x1d52   :  { %4303 = vmatmul.mubr.msk.f32.vlgmr.msra.gmra.mxu1 %vm44_vm0, %v3585_v2 }
0x1e12   :  { %v4304_v3 = vpop.f32.mrf.mxu1 }
0x1e13   :  { %v3677_v26 = vadd.f32 %v4304_v3, %v3926_v36 }
0x1e14   :  { %v3671_v18 = vpop.f32.mrf.mxu1 }
0x1e15   :  { %v3672_v22 = vadd.f32 %v3926_v36, %v3671_v18  ;;  %v3681_v55 = vmax.f32 %v3677_v26, 0.0 }
0x1e17   :  { %v3680_v38 = vmax.f32 %v3672_v22, 0.0 }
0x1e19   :  { %4321 = vmatprep.mubr.msk.f32.mxu0 %vm1820_vm13, %v3680_v38 }
0x1e1a   :  { %4322 = vmatmul.mubr.msk.f32.vlgmr.msra.gmra.mxu0 %vm1820_vm13, %v3681_v55 }
0x1eda   :  { %v4323_v56 = vpop.f32.mrf.mxu0 }
0x1edb   :  { %v3773_v11 = vadd.f32 %v4323_v56, %v5143_v62 }
0x1edc   :  { %v3763_v17 = vpop.f32.mrf.mxu0 }
0x1edd   :  { %v3779_v23 = vadd.f32 %v3939_v27, %v3773_v11  ;;  %v3772_v24 = vadd.f32 %v3763_v17, %v5146_v42 }
0x1edf   :  { %v3778_v52 = vadd.f32 %v3939_v27, %v3772_v24  ;;  %v3784_v25 = vsel %vm44_vm0, %v3779_v23, 0.0 }
0x1ee0   :  { %3785 = vadd.xlane.f32.xlu1 %v3784_v25 }
0x1ee1   :  { %v3781_v28 = vsel %vm44_vm0, %v3778_v52, 0.0 }
0x1ee2   :  { %3782 = vadd.xlane.f32.xlu0 %v3781_v28 }
0x1f69   :  { %v3786_v50 = vpop.xlane.xlu1 %3785 }
0x1f6a   :  { %v3788_v29 = vmul.f32 0.03125, %v3786_v50 }
0x1f6b   :  { %v3783_v20 = vpop.xlane.xlu0 %3782 }
0x1f6c   :  { %v3790_v58 = vsub.f32 %v3779_v23, %v3788_v29  ;;  %v3787_v60 = vmul.f32 0.03125, %v3783_v20 }
0x1f6e   :  { %v3789_v31 = vsub.f32 %v3778_v52, %v3787_v60  ;;  %v3792_v33 = vmul.f32 %v3790_v58, %v3790_v58  ;;  %v3820_v53 = vmul.f32 %v3818_v30, %v3790_v58 }
0x1f70   :  { %v3796_v62 = vsel %vm44_vm0, %v3792_v33, 0.0  ;;  %v3791_v51 = vmul.f32 %v3789_v31, %v3789_v31  ;;  %v3819_v57 = vmul.f32 %v3818_v30, %v3789_v31 }
0x1f71   :  { %3797 = vadd.xlane.f32.xlu1 %v3796_v62 }
0x1f72   :  { %v3793_v42 = vsel %vm44_vm0, %v3791_v51, 0.0 }
0x1f73   :  { %3794 = vadd.xlane.f32.xlu0 %v3793_v42 }
0x1ffa   :  { %v3798_v4 = vpop.xlane.xlu1 %3797 }
0x1ffb   :  { %v3800_v8 = vmul.f32 0.032258064, %v3798_v4 }
0x1ffc   :  { %v3795_v21 = vpop.xlane.xlu0 %3794 }
0x1ffd   :  { %4439 = vrsqrt.f32 %v3800_v8  ;;  %v3799_v34 = vmul.f32 0.032258064, %v3795_v21  ;;  %vm3810_vm7 = vcmp.eq.f32.partialorder %v3800_v8, inf  ;;  %v3813_v10 = vand.u32 2147483648, %v3800_v8 }
0x1ffe   :  { %vm3812_vm8 = vcmp.eq.f32.partialorder %v3800_v8, 0.0 }
0x1fff   :  { %4441 = vrsqrt.f32 %v3799_v34  ;;  %vm3803_vm9 = vcmp.eq.f32.partialorder %v3799_v34, inf  ;;  %v3806_v46 = vand.u32 2147483648, %v3799_v34  ;;  %vm3805_vm10 = vcmp.eq.f32.partialorder %v3799_v34, 0.0 }
0x200a   :  { %v4440_v54 = vpop.eup %4439 }
0x200b   :  { %v3809_v37 = vmul.f32 %v4440_v54, %v3800_v8 }
0x200c   :  { %v4442_v5 = vpop.eup %4441 }
0x200d   :  { %v3811_v6 = vsel %vm3810_vm7, %v3800_v8, %v3809_v37  ;;  %v3802_v43 = vmul.f32 %v4442_v5, %v3799_v34 }
0x200e   :  { %v3814_v40 = vsel %vm3812_vm8, %v3813_v10, %v3811_v6 }
0x200f   :  { %v3822_v44 = vadd.f32 1e-06, %v3814_v40  ;;  %v3804_v1 = vsel %vm3803_vm9, %v3799_v34, %v3802_v43 }
0x2010   :  { %v3807_v9 = vsel %vm3805_vm10, %v3806_v46, %v3804_v1 }
0x2011   :  { %4443 = vrcp.f32 %v3822_v44  ;;  %v3821_v47 = vadd.f32 1e-06, %v3807_v9 }
0x2013   :  { %4445 = vrcp.f32 %v3821_v47 }
0x201e   :  { %v4444_v45 = vpop.eup %4443 }
0x201f   :  { %v3826_v14 = vmul.f32 %v4444_v45, %v3820_v53 }
0x2020   :  { %v4446_v15 = vpop.eup %4445 }
0x2021   :  { %v3832_v16 = vadd.f32 %v3830_v32, %v3826_v14  ;;  %v3824_v35 = vmul.f32 %v4446_v15, %v3819_v57 }
0x2023   :  { %3834 = vst.msk [vmem:[#allocation2 + $0x8] sm:$0xff] %vm44_vm0, %v3832_v16  ;;  %v3831_v0 = vadd.f32 %v3830_v32, %v3824_v35 }
0x2025   :  { %3833 = vst.msk [vmem:[#allocation2] sm:$0xff] %vm44_vm0, %v3831_v0 }
0x2026   :  { %4458 = shalt.err (!%p4455_p4)
}
0x2027   :  { %s4487_s24 = smov 128  }
0x2028   :  { %3846 = dma.vmem_to_hbm [thread:$0]  %s3841_s1, 256, %s5233_s8, [#allocation3], %s4487_s24, %s4487_s24, %s4484_s11  }
0x2029   :  { %4467 = dma.done.wait [#allocation3], 256  }
0x202a   :  { %4468 = vsyncadd [#allocation3], 4294967040 }
0x202b   :  { %3850 = vsyncpa [#allocation3], 1 }

</bundles_post_ra>
